<compile_context>
chip_gen: v5e
topology: v5e:2x2
jax: 0.10.0
libtpu: 0.0.40
codegen_flags: <defaults>
</compile_context>

<pallas_src>
from functools import partial

import jax
import jax.numpy as jnp
from jax.experimental import pallas as pl
from jax.experimental.pallas import tpu as pltpu  # noqa: F401  (TPU backend)


def _round_up(x, m):
    return ((x + m - 1) // m) * m


# ----------------------------------------------------------------------------
# Single fused kernel: encoder -> verb head -> beam select -> role heads ->
# beam re-score -> per-example re-sort -> packed lane-dense output.
# ----------------------------------------------------------------------------
def _fused_kernel(img_ref, wenc_ref, benc_ref, wverb_ref, bverb_ref,
                  everb_ref, wrole_ref, brole_ref, out_ref,
                  *, beam, topk, n_roles, vocab_pad, n_verbs):
    NEG = jnp.float32(-1e30)

    # --- encoder: spatial mean-pool folded into the matmul (K = C*H*W) ------
    feat = jnp.dot(img_ref[...], wenc_ref[...],
                   preferred_element_type=jnp.float32) + benc_ref[...]
    feat = jnp.maximum(feat, 0.0)                                  # [B, hidden]

    # --- verb head + log_softmax --------------------------------------------
    vl = jnp.dot(feat, wverb_ref[...],
                 preferred_element_type=jnp.float32) + bverb_ref[...]
    vm = jnp.max(vl, axis=-1, keepdims=True)
    vlse = vm + jnp.log(jnp.sum(jnp.exp(vl - vm), axis=-1, keepdims=True))
    verb_logp = vl - vlse                                          # [B, n_verbs]

    B = verb_logp.shape[0]
    vlane = jax.lax.broadcasted_iota(jnp.int32, verb_logp.shape, 1)

    # --- in-kernel top-`beam` verbs (iterative max + mask; first-occ ties) ---
    work = verb_logp
    verb_ids, verb_vals, onehots = [], [], []
    for _ in range(beam):
        mt = jnp.max(work, axis=-1, keepdims=True)                 # [B, 1]
        it = jnp.min(jnp.where(work == mt, vlane, n_verbs),
                     axis=-1, keepdims=True)                       # [B, 1] int32
        oh = vlane == it
        verb_ids.append(it)
        verb_vals.append(mt)
        onehots.append(oh.astype(jnp.float32))
        work = jnp.where(oh, NEG, work)

    # --- verb-embedding gather as one-hot matmul; beams folded into rows -----
    onehot_all = jnp.concatenate(onehots, axis=0)                  # [beam*B, n_verbs]
    emb_all = jnp.dot(onehot_all, everb_ref[...],
                      preferred_element_type=jnp.float32)          # [beam*B, hidden]
    combined = jnp.concatenate([feat] * beam, axis=0) + emb_all    # [beam*B, hidden]

    # --- all roles x all beams in ONE MXU call (roles stacked on lanes) ------
    # padded bias lanes carry -1e30 so they never win the max nor affect LSE
    rl = jnp.dot(combined, wrole_ref[...],
                 preferred_element_type=jnp.float32) + brole_ref[...]
    # rl: [beam*B, n_roles*vocab_pad]

    rlane = jax.lax.broadcasted_iota(jnp.int32, (beam * B, vocab_pad), 1)
    role_score = jnp.zeros((beam * B, 1), jnp.float32)
    role_idx = []
    for r in range(n_roles):                                       # static, tiny
        lg = rl[:, r * vocab_pad:(r + 1) * vocab_pad]              # 128-aligned lane slice
        mr = jnp.max(lg, axis=-1, keepdims=True)
        lser = mr + jnp.log(jnp.sum(jnp.exp(lg - mr), axis=-1, keepdims=True))
        role_score = role_score + (mr - lser)                      # max of log_softmax
        role_idx.append(jnp.min(jnp.where(lg == mr, rlane, vocab_pad),
                                axis=-1, keepdims=True))           # [beam*B, 1]

    # --- regroup (beam, example) rows into [B, beam] matrices ----------------
    total_cols = []
    role_cols = [[] for _ in range(n_roles)]
    for t in range(beam):
        total_cols.append(verb_vals[t] + role_score[t * B:(t + 1) * B, :])
        for r in range(n_roles):
            role_cols[r].append(role_idx[r][t * B:(t + 1) * B, :])
    total = jnp.concatenate(total_cols, axis=-1)                   # [B, beam] f32
    verbs_mat = jnp.concatenate(verb_ids, axis=-1)                 # [B, beam] int32
    roles_mat = [jnp.concatenate(role_cols[r], axis=-1)            # [B, beam] int32
                 for r in range(n_roles)]

    # --- per-example beam re-sort: iterative top-`topk` selection ------------
    blane = jax.lax.broadcasted_iota(jnp.int32, (B, beam), 1)
    work2 = total
    out_cols = []
    for _ in range(topk):
        m2 = jnp.max(work2, axis=-1, keepdims=True)
        j2 = jnp.min(jnp.where(work2 == m2, blane, beam),
                     axis=-1, keepdims=True)                       # first-occ ties
        sel = blane == j2
        out_cols.append(jnp.sum(jnp.where(sel, verbs_mat, 0),
                                axis=-1, keepdims=True))
        for r in range(n_roles):
            out_cols.append(jnp.sum(jnp.where(sel, roles_mat[r], 0),
                                    axis=-1, keepdims=True))
        work2 = jnp.where(sel, NEG, work2)

    # --- pack into one lane-dense int32 slab (no masked narrow stores) -------
    packed = jnp.concatenate(out_cols, axis=-1).astype(jnp.int32)  # [B, topk*(1+n_roles)]
    out_ref[...] = jnp.pad(
        packed, ((0, 0), (0, out_ref.shape[-1] - packed.shape[-1])))


# ----------------------------------------------------------------------------
# Parameters (deterministic synthetic init) + one-time packing for the kernel
# ----------------------------------------------------------------------------
def build_params(key, C, hidden, n_verbs, n_roles, vocab):
    ks = jax.random.split(key, 5)
    return {
        "w_enc":  jax.random.normal(ks[0], (C, hidden), jnp.float32) * 0.1,
        "b_enc":  jnp.zeros((1, hidden), jnp.float32),
        "w_verb": jax.random.normal(ks[1], (hidden, n_verbs), jnp.float32) * 0.1,
        "b_verb": jnp.zeros((1, n_verbs), jnp.float32),
        "e_verb": jax.random.normal(ks[2], (n_verbs, hidden), jnp.float32) * 0.1,
        "w_role": jax.random.normal(ks[3], (n_roles, hidden, vocab), jnp.float32) * 0.1,
        "b_role": jax.random.normal(ks[4], (n_roles, 1, vocab), jnp.float32) * 0.01,
    }


def pack_params(params, H, W):
    """One-time repack so the hot path is a single pallas_call."""
    C, hidden = params["w_enc"].shape
    n_verbs = params["w_verb"].shape[1]
    n_roles, _, vocab = params["w_role"].shape
    hw = H * W
    vocab_pad = _round_up(vocab, 128)

    # fold the spatial mean-pool into the encoder weight: K becomes C*H*W
    w_enc_pooled = jnp.repeat(params["w_enc"], hw, axis=0) / float(hw)

    # stack role heads along lanes, each padded to a 128-lane boundary;
    # padded bias lanes get -1e30 so they never win max / contribute to LSE.
    w_pad = jnp.pad(params["w_role"], ((0, 0), (0, 0), (0, vocab_pad - vocab)))
    w_role_stk = jnp.transpose(w_pad, (1, 0, 2)).reshape(hidden,
                                                         n_roles * vocab_pad)
    b_pad = jnp.pad(params["b_role"], ((0, 0), (0, 0), (0, vocab_pad - vocab)),
                    constant_values=-1e30)
    b_role_stk = jnp.transpose(b_pad, (1, 0, 2)).reshape(1, n_roles * vocab_pad)

    packed = {
        "w_enc_pooled": w_enc_pooled,
        "b_enc": params["b_enc"],
        "w_verb": params["w_verb"],
        "b_verb": params["b_verb"],
        "e_verb": params["e_verb"],
        "w_role_stk": w_role_stk,
        "b_role_stk": b_role_stk,
    }
    meta = dict(hidden=hidden, n_verbs=n_verbs, n_roles=n_roles,
                vocab=vocab, vocab_pad=vocab_pad)
    return packed, meta


# ----------------------------------------------------------------------------
# Forward pass mirroring BaseModel.forward(img, verb, labels, beam, topk)
# ----------------------------------------------------------------------------
def base_model_forward(packed, meta, img, verb, labels, beam=4, topk=2):
    # `verb` / `labels` accepted for API parity; the eval-path synthetic verb
    # module scores from image features only.
    del verb, labels
    B, C, H, W = img.shape
    hidden = meta["hidden"]
    n_verbs = meta["n_verbs"]
    n_roles = meta["n_roles"]
    vocab_pad = meta["vocab_pad"]
    out_lanes = _round_up(topk * (1 + n_roles), 128)   # lane-dense output slab

    img2d = img.reshape(B, C * H * W)

    def spec2d(shape):
        return pl.BlockSpec(shape, lambda i: (0, 0))

    packed_out = pl.pallas_call(
        partial(_fused_kernel, beam=beam, topk=topk, n_roles=n_roles,
                vocab_pad=vocab_pad, n_verbs=n_verbs),
        grid=(1,),
        in_specs=[
            spec2d((B, C * H * W)),
            spec2d((C * H * W, hidden)),
            spec2d((1, hidden)),
            spec2d((hidden, n_verbs)),
            spec2d((1, n_verbs)),
            spec2d((n_verbs, hidden)),
            spec2d((hidden, n_roles * vocab_pad)),
            spec2d((1, n_roles * vocab_pad)),
        ],
        out_specs=spec2d((B, out_lanes)),
        out_shape=jax.ShapeDtypeStruct((B, out_lanes), jnp.int32),
    )(img2d, packed["w_enc_pooled"], packed["b_enc"],
      packed["w_verb"], packed["b_verb"], packed["e_verb"],
      packed["w_role_stk"], packed["b_role_stk"])

    # layout per row: [v_0, r_00..r_0{R-1}, v_1, r_10.., ...] then zero pad
    sel = packed_out[:, :topk * (1 + n_roles)].reshape(B, topk, 1 + n_roles)
    verb_beam = sel[:, :, 0]
    roles_beam = sel[:, :, 1:]
    return verb_beam, roles_beam


if __name__ == "__main__":
    key = jax.random.PRNGKey(0)
    B, C, H, W = 2, 4, 16, 16
    hidden, n_verbs, n_roles, vocab = 32, 16, 3, 32
    beam, topk = 4, 2

    k_img, k_param = jax.random.split(key)
    img = jax.random.normal(k_img, (B, C, H, W), jnp.float32)
    verb = jnp.zeros((B,), jnp.int32)              # unused in eval path
    labels = jnp.zeros((B, n_roles), jnp.int32)    # unused in eval path

    params = build_params(k_param, C, hidden, n_verbs, n_roles, vocab)
    packed, meta = pack_params(params, H, W)

    verb_beam, roles_beam = base_model_forward(packed, meta, img, verb, labels,
                                               beam=beam, topk=topk)
    jax.block_until_ready((verb_beam, roles_beam))
    assert verb_beam.shape == (B, topk)
    assert roles_beam.shape == (B, topk, n_roles)
    print("KERNEL_OK")
</pallas_src>

<mosaic_0001>
module attributes {stable_mosaic.version = 11 : i64} {
  func.func @_fused_kernel(%arg0: i32, %arg1: memref<2x1024xf32, #tpu.memory_space<vmem>>, %arg2: memref<1024x32xf32, #tpu.memory_space<vmem>>, %arg3: memref<1x32xf32, #tpu.memory_space<vmem>>, %arg4: memref<32x16xf32, #tpu.memory_space<vmem>>, %arg5: memref<1x16xf32, #tpu.memory_space<vmem>>, %arg6: memref<16x32xf32, #tpu.memory_space<vmem>>, %arg7: memref<32x384xf32, #tpu.memory_space<vmem>>, %arg8: memref<1x384xf32, #tpu.memory_space<vmem>>, %arg9: memref<2x128xi32, #tpu.memory_space<vmem>>) attributes {dimension_semantics = [#tpu.dimension_semantics<arbitrary>], iteration_bounds = array<i64: 1>, scalar_prefetch = 0 : i64, scratch_operands = 0 : i64, tpu.core_type = #tpu.core_type<tc>, window_params = [{pipeline_mode = #tpu.pipeline_mode<synchronous>, transform_indices = @transform_0, window_bounds = array<i64: 2, 1024>}, {pipeline_mode = #tpu.pipeline_mode<synchronous>, transform_indices = @transform_1, window_bounds = array<i64: 1024, 32>}, {pipeline_mode = #tpu.pipeline_mode<synchronous>, transform_indices = @transform_2, window_bounds = array<i64: 1, 32>}, {pipeline_mode = #tpu.pipeline_mode<synchronous>, transform_indices = @transform_3, window_bounds = array<i64: 32, 16>}, {pipeline_mode = #tpu.pipeline_mode<synchronous>, transform_indices = @transform_4, window_bounds = array<i64: 1, 16>}, {pipeline_mode = #tpu.pipeline_mode<synchronous>, transform_indices = @transform_5, window_bounds = array<i64: 16, 32>}, {pipeline_mode = #tpu.pipeline_mode<synchronous>, transform_indices = @transform_6, window_bounds = array<i64: 32, 384>}, {pipeline_mode = #tpu.pipeline_mode<synchronous>, transform_indices = @transform_7, window_bounds = array<i64: 1, 384>}, {pipeline_mode = #tpu.pipeline_mode<synchronous>, transform_indices = @transform_8, window_bounds = array<i64: 2, 128>}]} {
    %c0 = arith.constant 0 : index
    %c0_0 = arith.constant 0 : index
    %0 = vector.load %arg1[%c0, %c0_0] : memref<2x1024xf32, #tpu.memory_space<vmem>>, vector<2x1024xf32>
    %c0_1 = arith.constant 0 : index
    %c0_2 = arith.constant 0 : index
    %1 = vector.load %arg2[%c0_1, %c0_2] : memref<1024x32xf32, #tpu.memory_space<vmem>>, vector<1024x32xf32>
    %cst = arith.constant dense<0.000000e+00> : vector<2x32xf32>
    %2 = tpu.matmul %0, %1, %cst {dimension_numbers = #tpu.dot_dimension_numbers<[1], [0], [0], [1], [0, 0, 1, 1], [], []>} : vector<2x1024xf32>, vector<1024x32xf32>, vector<2x32xf32> -> vector<2x32xf32>
    %c0_3 = arith.constant 0 : index
    %c0_4 = arith.constant 0 : index
    %3 = vector.load %arg3[%c0_3, %c0_4] : memref<1x32xf32, #tpu.memory_space<vmem>>, vector<1x32xf32>
    %4 = vector.broadcast %3 : vector<1x32xf32> to vector<2x32xf32>
    %5 = arith.addf %2, %4 : vector<2x32xf32>
    %cst_5 = arith.constant 0.000000e+00 : f32
    %6 = vector.broadcast %cst_5 : f32 to vector<2x32xf32>
    %7 = arith.maximumf %5, %6 : vector<2x32xf32>
    %c0_6 = arith.constant 0 : index
    %c0_7 = arith.constant 0 : index
    %8 = vector.load %arg4[%c0_6, %c0_7] : memref<32x16xf32, #tpu.memory_space<vmem>>, vector<32x16xf32>
    %cst_8 = arith.constant dense<0.000000e+00> : vector<2x16xf32>
    %9 = tpu.matmul %7, %8, %cst_8 {dimension_numbers = #tpu.dot_dimension_numbers<[1], [0], [0], [1], [0, 0, 1, 1], [], []>} : vector<2x32xf32>, vector<32x16xf32>, vector<2x16xf32> -> vector<2x16xf32>
    %c0_9 = arith.constant 0 : index
    %c0_10 = arith.constant 0 : index
    %10 = vector.load %arg5[%c0_9, %c0_10] : memref<1x16xf32, #tpu.memory_space<vmem>>, vector<1x16xf32>
    %11 = vector.broadcast %10 : vector<1x16xf32> to vector<2x16xf32>
    %12 = arith.addf %9, %11 : vector<2x16xf32>
    %cst_11 = arith.constant dense<0xFF800000> : vector<2xf32>
    %13 = vector.multi_reduction <maximumf>, %12, %cst_11 [1] : vector<2x16xf32> to vector<2xf32>
    %14 = vector.shape_cast %13 : vector<2xf32> to vector<2x1xf32>
    %15 = vector.broadcast %14 : vector<2x1xf32> to vector<2x16xf32>
    %16 = arith.subf %12, %15 : vector<2x16xf32>
    %17 = math.exp %16 : vector<2x16xf32>
    %cst_12 = arith.constant dense<0.000000e+00> : vector<2xf32>
    %18 = vector.multi_reduction <add>, %17, %cst_12 [1] : vector<2x16xf32> to vector<2xf32>
    %19 = vector.shape_cast %18 : vector<2xf32> to vector<2x1xf32>
    %20 = math.log %19 : vector<2x1xf32>
    %21 = arith.addf %14, %20 : vector<2x1xf32>
    %22 = vector.broadcast %21 : vector<2x1xf32> to vector<2x16xf32>
    %23 = arith.subf %12, %22 : vector<2x16xf32>
    %24 = tpu.iota {dimensions = array<i32: 1>} : vector<2x16xi32>
    %cst_13 = arith.constant dense<0xFF800000> : vector<2xf32>
    %25 = vector.multi_reduction <maximumf>, %23, %cst_13 [1] : vector<2x16xf32> to vector<2xf32>
    %26 = vector.shape_cast %25 : vector<2xf32> to vector<2x1xf32>
    %27 = vector.broadcast %26 : vector<2x1xf32> to vector<2x16xf32>
    %28 = arith.cmpf oeq, %23, %27 : vector<2x16xf32>
    %c16_i32 = arith.constant 16 : i32
    %29 = vector.broadcast %c16_i32 : i32 to vector<2x16xi32>
    %30 = arith.select %28, %24, %29 : vector<2x16xi1>, vector<2x16xi32>
    %cst_14 = arith.constant dense<2147483647> : vector<2xi32>
    %31 = vector.multi_reduction <minsi>, %30, %cst_14 [1] : vector<2x16xi32> to vector<2xi32>
    %32 = vector.shape_cast %31 : vector<2xi32> to vector<2x1xi32>
    %33 = vector.broadcast %32 : vector<2x1xi32> to vector<2x16xi32>
    %34 = arith.cmpi eq, %24, %33 : vector<2x16xi32>
    %35 = arith.extui %34 : vector<2x16xi1> to vector<2x16xi32>
    %36 = arith.sitofp %35 : vector<2x16xi32> to vector<2x16xf32>
    %cst_15 = arith.constant -1.000000e+30 : f32
    %37 = vector.broadcast %cst_15 : f32 to vector<2x16xf32>
    %38 = arith.select %34, %37, %23 : vector<2x16xi1>, vector<2x16xf32>
    %cst_16 = arith.constant dense<0xFF800000> : vector<2xf32>
    %39 = vector.multi_reduction <maximumf>, %38, %cst_16 [1] : vector<2x16xf32> to vector<2xf32>
    %40 = vector.shape_cast %39 : vector<2xf32> to vector<2x1xf32>
    %41 = vector.broadcast %40 : vector<2x1xf32> to vector<2x16xf32>
    %42 = arith.cmpf oeq, %38, %41 : vector<2x16xf32>
    %c16_i32_17 = arith.constant 16 : i32
    %43 = vector.broadcast %c16_i32_17 : i32 to vector<2x16xi32>
    %44 = arith.select %42, %24, %43 : vector<2x16xi1>, vector<2x16xi32>
    %cst_18 = arith.constant dense<2147483647> : vector<2xi32>
    %45 = vector.multi_reduction <minsi>, %44, %cst_18 [1] : vector<2x16xi32> to vector<2xi32>
    %46 = vector.shape_cast %45 : vector<2xi32> to vector<2x1xi32>
    %47 = vector.broadcast %46 : vector<2x1xi32> to vector<2x16xi32>
    %48 = arith.cmpi eq, %24, %47 : vector<2x16xi32>
    %49 = arith.extui %48 : vector<2x16xi1> to vector<2x16xi32>
    %50 = arith.sitofp %49 : vector<2x16xi32> to vector<2x16xf32>
    %cst_19 = arith.constant -1.000000e+30 : f32
    %51 = vector.broadcast %cst_19 : f32 to vector<2x16xf32>
    %52 = arith.select %48, %51, %38 : vector<2x16xi1>, vector<2x16xf32>
    %cst_20 = arith.constant dense<0xFF800000> : vector<2xf32>
    %53 = vector.multi_reduction <maximumf>, %52, %cst_20 [1] : vector<2x16xf32> to vector<2xf32>
    %54 = vector.shape_cast %53 : vector<2xf32> to vector<2x1xf32>
    %55 = vector.broadcast %54 : vector<2x1xf32> to vector<2x16xf32>
    %56 = arith.cmpf oeq, %52, %55 : vector<2x16xf32>
    %c16_i32_21 = arith.constant 16 : i32
    %57 = vector.broadcast %c16_i32_21 : i32 to vector<2x16xi32>
    %58 = arith.select %56, %24, %57 : vector<2x16xi1>, vector<2x16xi32>
    %cst_22 = arith.constant dense<2147483647> : vector<2xi32>
    %59 = vector.multi_reduction <minsi>, %58, %cst_22 [1] : vector<2x16xi32> to vector<2xi32>
    %60 = vector.shape_cast %59 : vector<2xi32> to vector<2x1xi32>
    %61 = vector.broadcast %60 : vector<2x1xi32> to vector<2x16xi32>
    %62 = arith.cmpi eq, %24, %61 : vector<2x16xi32>
    %63 = arith.extui %62 : vector<2x16xi1> to vector<2x16xi32>
    %64 = arith.sitofp %63 : vector<2x16xi32> to vector<2x16xf32>
    %cst_23 = arith.constant -1.000000e+30 : f32
    %65 = vector.broadcast %cst_23 : f32 to vector<2x16xf32>
    %66 = arith.select %62, %65, %52 : vector<2x16xi1>, vector<2x16xf32>
    %cst_24 = arith.constant dense<0xFF800000> : vector<2xf32>
    %67 = vector.multi_reduction <maximumf>, %66, %cst_24 [1] : vector<2x16xf32> to vector<2xf32>
    %68 = vector.shape_cast %67 : vector<2xf32> to vector<2x1xf32>
    %69 = vector.broadcast %68 : vector<2x1xf32> to vector<2x16xf32>
    %70 = arith.cmpf oeq, %66, %69 : vector<2x16xf32>
    %c16_i32_25 = arith.constant 16 : i32
    %71 = vector.broadcast %c16_i32_25 : i32 to vector<2x16xi32>
    %72 = arith.select %70, %24, %71 : vector<2x16xi1>, vector<2x16xi32>
    %cst_26 = arith.constant dense<2147483647> : vector<2xi32>
    %73 = vector.multi_reduction <minsi>, %72, %cst_26 [1] : vector<2x16xi32> to vector<2xi32>
    %74 = vector.shape_cast %73 : vector<2xi32> to vector<2x1xi32>
    %75 = vector.broadcast %74 : vector<2x1xi32> to vector<2x16xi32>
    %76 = arith.cmpi eq, %24, %75 : vector<2x16xi32>
    %77 = arith.extui %76 : vector<2x16xi1> to vector<2x16xi32>
    %78 = arith.sitofp %77 : vector<2x16xi32> to vector<2x16xf32>
    %79 = tpu.concatenate %36, %50, %64, %78 in 0 : vector<2x16xf32>, vector<2x16xf32>, vector<2x16xf32>, vector<2x16xf32> -> vector<8x16xf32>
    %c0_27 = arith.constant 0 : index
    %c0_28 = arith.constant 0 : index
    %80 = vector.load %arg6[%c0_27, %c0_28] : memref<16x32xf32, #tpu.memory_space<vmem>>, vector<16x32xf32>
    %cst_29 = arith.constant dense<0.000000e+00> : vector<8x32xf32>
    %81 = tpu.matmul %79, %80, %cst_29 {dimension_numbers = #tpu.dot_dimension_numbers<[1], [0], [0], [1], [0, 0, 1, 1], [], []>} : vector<8x16xf32>, vector<16x32xf32>, vector<8x32xf32> -> vector<8x32xf32>
    %82 = tpu.concatenate %7, %7, %7, %7 in 0 : vector<2x32xf32>, vector<2x32xf32>, vector<2x32xf32>, vector<2x32xf32> -> vector<8x32xf32>
    %83 = arith.addf %82, %81 : vector<8x32xf32>
    %c0_30 = arith.constant 0 : index
    %c0_31 = arith.constant 0 : index
    %84 = vector.load %arg7[%c0_30, %c0_31] : memref<32x384xf32, #tpu.memory_space<vmem>>, vector<32x384xf32>
    %cst_32 = arith.constant dense<0.000000e+00> : vector<8x384xf32>
    %85 = tpu.matmul %83, %84, %cst_32 {dimension_numbers = #tpu.dot_dimension_numbers<[1], [0], [0], [1], [0, 0, 1, 1], [], []>} : vector<8x32xf32>, vector<32x384xf32>, vector<8x384xf32> -> vector<8x384xf32>
    %c0_33 = arith.constant 0 : index
    %c0_34 = arith.constant 0 : index
    %86 = vector.load %arg8[%c0_33, %c0_34] : memref<1x384xf32, #tpu.memory_space<vmem>>, vector<1x384xf32>
    %87 = vector.broadcast %86 : vector<1x384xf32> to vector<8x384xf32>
    %88 = arith.addf %85, %87 : vector<8x384xf32>
    %89 = tpu.iota {dimensions = array<i32: 1>} : vector<8x128xi32>
    %cst_35 = arith.constant 0.000000e+00 : f32
    %90 = vector.broadcast %cst_35 : f32 to vector<8x1xf32>
    %91 = vector.extract_strided_slice %88 {offsets = [0, 0], sizes = [8, 128], strides = [1, 1]} : vector<8x384xf32> to vector<8x128xf32>
    %cst_36 = arith.constant dense<0xFF800000> : vector<8xf32>
    %92 = vector.multi_reduction <maximumf>, %91, %cst_36 [1] : vector<8x128xf32> to vector<8xf32>
    %93 = vector.shape_cast %92 : vector<8xf32> to vector<8x1xf32>
    %94 = vector.broadcast %93 : vector<8x1xf32> to vector<8x128xf32>
    %95 = arith.subf %91, %94 : vector<8x128xf32>
    %96 = math.exp %95 : vector<8x128xf32>
    %cst_37 = arith.constant dense<0.000000e+00> : vector<8xf32>
    %97 = vector.multi_reduction <add>, %96, %cst_37 [1] : vector<8x128xf32> to vector<8xf32>
    %98 = vector.shape_cast %97 : vector<8xf32> to vector<8x1xf32>
    %99 = math.log %98 : vector<8x1xf32>
    %100 = arith.addf %93, %99 : vector<8x1xf32>
    %101 = arith.subf %93, %100 : vector<8x1xf32>
    %102 = arith.addf %90, %101 : vector<8x1xf32>
    %103 = vector.broadcast %93 : vector<8x1xf32> to vector<8x128xf32>
    %104 = arith.cmpf oeq, %91, %103 : vector<8x128xf32>
    %c128_i32 = arith.constant 128 : i32
    %105 = vector.broadcast %c128_i32 : i32 to vector<8x128xi32>
    %106 = arith.select %104, %89, %105 : vector<8x128xi1>, vector<8x128xi32>
    %cst_38 = arith.constant dense<2147483647> : vector<8xi32>
    %107 = vector.multi_reduction <minsi>, %106, %cst_38 [1] : vector<8x128xi32> to vector<8xi32>
    %108 = vector.shape_cast %107 : vector<8xi32> to vector<8x1xi32>
    %109 = vector.extract_strided_slice %88 {offsets = [0, 128], sizes = [8, 128], strides = [1, 1]} : vector<8x384xf32> to vector<8x128xf32>
    %cst_39 = arith.constant dense<0xFF800000> : vector<8xf32>
    %110 = vector.multi_reduction <maximumf>, %109, %cst_39 [1] : vector<8x128xf32> to vector<8xf32>
    %111 = vector.shape_cast %110 : vector<8xf32> to vector<8x1xf32>
    %112 = vector.broadcast %111 : vector<8x1xf32> to vector<8x128xf32>
    %113 = arith.subf %109, %112 : vector<8x128xf32>
    %114 = math.exp %113 : vector<8x128xf32>
    %cst_40 = arith.constant dense<0.000000e+00> : vector<8xf32>
    %115 = vector.multi_reduction <add>, %114, %cst_40 [1] : vector<8x128xf32> to vector<8xf32>
    %116 = vector.shape_cast %115 : vector<8xf32> to vector<8x1xf32>
    %117 = math.log %116 : vector<8x1xf32>
    %118 = arith.addf %111, %117 : vector<8x1xf32>
    %119 = arith.subf %111, %118 : vector<8x1xf32>
    %120 = arith.addf %102, %119 : vector<8x1xf32>
    %121 = vector.broadcast %111 : vector<8x1xf32> to vector<8x128xf32>
    %122 = arith.cmpf oeq, %109, %121 : vector<8x128xf32>
    %c128_i32_41 = arith.constant 128 : i32
    %123 = vector.broadcast %c128_i32_41 : i32 to vector<8x128xi32>
    %124 = arith.select %122, %89, %123 : vector<8x128xi1>, vector<8x128xi32>
    %cst_42 = arith.constant dense<2147483647> : vector<8xi32>
    %125 = vector.multi_reduction <minsi>, %124, %cst_42 [1] : vector<8x128xi32> to vector<8xi32>
    %126 = vector.shape_cast %125 : vector<8xi32> to vector<8x1xi32>
    %127 = vector.extract_strided_slice %88 {offsets = [0, 256], sizes = [8, 128], strides = [1, 1]} : vector<8x384xf32> to vector<8x128xf32>
    %cst_43 = arith.constant dense<0xFF800000> : vector<8xf32>
    %128 = vector.multi_reduction <maximumf>, %127, %cst_43 [1] : vector<8x128xf32> to vector<8xf32>
    %129 = vector.shape_cast %128 : vector<8xf32> to vector<8x1xf32>
    %130 = vector.broadcast %129 : vector<8x1xf32> to vector<8x128xf32>
    %131 = arith.subf %127, %130 : vector<8x128xf32>
    %132 = math.exp %131 : vector<8x128xf32>
    %cst_44 = arith.constant dense<0.000000e+00> : vector<8xf32>
    %133 = vector.multi_reduction <add>, %132, %cst_44 [1] : vector<8x128xf32> to vector<8xf32>
    %134 = vector.shape_cast %133 : vector<8xf32> to vector<8x1xf32>
    %135 = math.log %134 : vector<8x1xf32>
    %136 = arith.addf %129, %135 : vector<8x1xf32>
    %137 = arith.subf %129, %136 : vector<8x1xf32>
    %138 = arith.addf %120, %137 : vector<8x1xf32>
    %139 = vector.broadcast %129 : vector<8x1xf32> to vector<8x128xf32>
    %140 = arith.cmpf oeq, %127, %139 : vector<8x128xf32>
    %c128_i32_45 = arith.constant 128 : i32
    %141 = vector.broadcast %c128_i32_45 : i32 to vector<8x128xi32>
    %142 = arith.select %140, %89, %141 : vector<8x128xi1>, vector<8x128xi32>
    %cst_46 = arith.constant dense<2147483647> : vector<8xi32>
    %143 = vector.multi_reduction <minsi>, %142, %cst_46 [1] : vector<8x128xi32> to vector<8xi32>
    %144 = vector.shape_cast %143 : vector<8xi32> to vector<8x1xi32>
    %145 = vector.extract_strided_slice %138 {offsets = [0, 0], sizes = [2, 1], strides = [1, 1]} : vector<8x1xf32> to vector<2x1xf32>
    %146 = arith.addf %26, %145 : vector<2x1xf32>
    %147 = vector.extract_strided_slice %108 {offsets = [0, 0], sizes = [2, 1], strides = [1, 1]} : vector<8x1xi32> to vector<2x1xi32>
    %148 = vector.extract_strided_slice %126 {offsets = [0, 0], sizes = [2, 1], strides = [1, 1]} : vector<8x1xi32> to vector<2x1xi32>
    %149 = vector.extract_strided_slice %144 {offsets = [0, 0], sizes = [2, 1], strides = [1, 1]} : vector<8x1xi32> to vector<2x1xi32>
    %150 = vector.extract_strided_slice %138 {offsets = [2, 0], sizes = [2, 1], strides = [1, 1]} : vector<8x1xf32> to vector<2x1xf32>
    %151 = arith.addf %40, %150 : vector<2x1xf32>
    %152 = vector.extract_strided_slice %108 {offsets = [2, 0], sizes = [2, 1], strides = [1, 1]} : vector<8x1xi32> to vector<2x1xi32>
    %153 = vector.extract_strided_slice %126 {offsets = [2, 0], sizes = [2, 1], strides = [1, 1]} : vector<8x1xi32> to vector<2x1xi32>
    %154 = vector.extract_strided_slice %144 {offsets = [2, 0], sizes = [2, 1], strides = [1, 1]} : vector<8x1xi32> to vector<2x1xi32>
    %155 = vector.extract_strided_slice %138 {offsets = [4, 0], sizes = [2, 1], strides = [1, 1]} : vector<8x1xf32> to vector<2x1xf32>
    %156 = arith.addf %54, %155 : vector<2x1xf32>
    %157 = vector.extract_strided_slice %108 {offsets = [4, 0], sizes = [2, 1], strides = [1, 1]} : vector<8x1xi32> to vector<2x1xi32>
    %158 = vector.extract_strided_slice %126 {offsets = [4, 0], sizes = [2, 1], strides = [1, 1]} : vector<8x1xi32> to vector<2x1xi32>
    %159 = vector.extract_strided_slice %144 {offsets = [4, 0], sizes = [2, 1], strides = [1, 1]} : vector<8x1xi32> to vector<2x1xi32>
    %160 = vector.extract_strided_slice %138 {offsets = [6, 0], sizes = [2, 1], strides = [1, 1]} : vector<8x1xf32> to vector<2x1xf32>
    %161 = arith.addf %68, %160 : vector<2x1xf32>
    %162 = vector.extract_strided_slice %108 {offsets = [6, 0], sizes = [2, 1], strides = [1, 1]} : vector<8x1xi32> to vector<2x1xi32>
    %163 = vector.extract_strided_slice %126 {offsets = [6, 0], sizes = [2, 1], strides = [1, 1]} : vector<8x1xi32> to vector<2x1xi32>
    %164 = vector.extract_strided_slice %144 {offsets = [6, 0], sizes = [2, 1], strides = [1, 1]} : vector<8x1xi32> to vector<2x1xi32>
    %165 = tpu.concatenate %146, %151, %156, %161 in 1 : vector<2x1xf32>, vector<2x1xf32>, vector<2x1xf32>, vector<2x1xf32> -> vector<2x4xf32>
    %166 = tpu.concatenate %32, %46, %60, %74 in 1 : vector<2x1xi32>, vector<2x1xi32>, vector<2x1xi32>, vector<2x1xi32> -> vector<2x4xi32>
    %167 = tpu.concatenate %147, %152, %157, %162 in 1 : vector<2x1xi32>, vector<2x1xi32>, vector<2x1xi32>, vector<2x1xi32> -> vector<2x4xi32>
    %168 = tpu.concatenate %148, %153, %158, %163 in 1 : vector<2x1xi32>, vector<2x1xi32>, vector<2x1xi32>, vector<2x1xi32> -> vector<2x4xi32>
    %169 = tpu.concatenate %149, %154, %159, %164 in 1 : vector<2x1xi32>, vector<2x1xi32>, vector<2x1xi32>, vector<2x1xi32> -> vector<2x4xi32>
    %170 = tpu.iota {dimensions = array<i32: 1>} : vector<2x4xi32>
    %cst_47 = arith.constant dense<0xFF800000> : vector<2xf32>
    %171 = vector.multi_reduction <maximumf>, %165, %cst_47 [1] : vector<2x4xf32> to vector<2xf32>
    %172 = vector.shape_cast %171 : vector<2xf32> to vector<2x1xf32>
    %173 = vector.broadcast %172 : vector<2x1xf32> to vector<2x4xf32>
    %174 = arith.cmpf oeq, %165, %173 : vector<2x4xf32>
    %c4_i32 = arith.constant 4 : i32
    %175 = vector.broadcast %c4_i32 : i32 to vector<2x4xi32>
    %176 = arith.select %174, %170, %175 : vector<2x4xi1>, vector<2x4xi32>
    %cst_48 = arith.constant dense<2147483647> : vector<2xi32>
    %177 = vector.multi_reduction <minsi>, %176, %cst_48 [1] : vector<2x4xi32> to vector<2xi32>
    %178 = vector.shape_cast %177 : vector<2xi32> to vector<2x1xi32>
    %179 = vector.broadcast %178 : vector<2x1xi32> to vector<2x4xi32>
    %180 = arith.cmpi eq, %170, %179 : vector<2x4xi32>
    %c0_i32 = arith.constant 0 : i32
    %181 = vector.broadcast %c0_i32 : i32 to vector<2x4xi32>
    %182 = arith.select %180, %166, %181 : vector<2x4xi1>, vector<2x4xi32>
    %cst_49 = arith.constant dense<0> : vector<2xi32>
    %183 = vector.multi_reduction <add>, %182, %cst_49 [1] : vector<2x4xi32> to vector<2xi32>
    %184 = vector.shape_cast %183 : vector<2xi32> to vector<2x1xi32>
    %c0_i32_50 = arith.constant 0 : i32
    %185 = vector.broadcast %c0_i32_50 : i32 to vector<2x4xi32>
    %186 = arith.select %180, %167, %185 : vector<2x4xi1>, vector<2x4xi32>
    %cst_51 = arith.constant dense<0> : vector<2xi32>
    %187 = vector.multi_reduction <add>, %186, %cst_51 [1] : vector<2x4xi32> to vector<2xi32>
    %188 = vector.shape_cast %187 : vector<2xi32> to vector<2x1xi32>
    %c0_i32_52 = arith.constant 0 : i32
    %189 = vector.broadcast %c0_i32_52 : i32 to vector<2x4xi32>
    %190 = arith.select %180, %168, %189 : vector<2x4xi1>, vector<2x4xi32>
    %cst_53 = arith.constant dense<0> : vector<2xi32>
    %191 = vector.multi_reduction <add>, %190, %cst_53 [1] : vector<2x4xi32> to vector<2xi32>
    %192 = vector.shape_cast %191 : vector<2xi32> to vector<2x1xi32>
    %c0_i32_54 = arith.constant 0 : i32
    %193 = vector.broadcast %c0_i32_54 : i32 to vector<2x4xi32>
    %194 = arith.select %180, %169, %193 : vector<2x4xi1>, vector<2x4xi32>
    %cst_55 = arith.constant dense<0> : vector<2xi32>
    %195 = vector.multi_reduction <add>, %194, %cst_55 [1] : vector<2x4xi32> to vector<2xi32>
    %196 = vector.shape_cast %195 : vector<2xi32> to vector<2x1xi32>
    %cst_56 = arith.constant -1.000000e+30 : f32
    %197 = vector.broadcast %cst_56 : f32 to vector<2x4xf32>
    %198 = arith.select %180, %197, %165 : vector<2x4xi1>, vector<2x4xf32>
    %cst_57 = arith.constant dense<0xFF800000> : vector<2xf32>
    %199 = vector.multi_reduction <maximumf>, %198, %cst_57 [1] : vector<2x4xf32> to vector<2xf32>
    %200 = vector.shape_cast %199 : vector<2xf32> to vector<2x1xf32>
    %201 = vector.broadcast %200 : vector<2x1xf32> to vector<2x4xf32>
    %202 = arith.cmpf oeq, %198, %201 : vector<2x4xf32>
    %c4_i32_58 = arith.constant 4 : i32
    %203 = vector.broadcast %c4_i32_58 : i32 to vector<2x4xi32>
    %204 = arith.select %202, %170, %203 : vector<2x4xi1>, vector<2x4xi32>
    %cst_59 = arith.constant dense<2147483647> : vector<2xi32>
    %205 = vector.multi_reduction <minsi>, %204, %cst_59 [1] : vector<2x4xi32> to vector<2xi32>
    %206 = vector.shape_cast %205 : vector<2xi32> to vector<2x1xi32>
    %207 = vector.broadcast %206 : vector<2x1xi32> to vector<2x4xi32>
    %208 = arith.cmpi eq, %170, %207 : vector<2x4xi32>
    %c0_i32_60 = arith.constant 0 : i32
    %209 = vector.broadcast %c0_i32_60 : i32 to vector<2x4xi32>
    %210 = arith.select %208, %166, %209 : vector<2x4xi1>, vector<2x4xi32>
    %cst_61 = arith.constant dense<0> : vector<2xi32>
    %211 = vector.multi_reduction <add>, %210, %cst_61 [1] : vector<2x4xi32> to vector<2xi32>
    %212 = vector.shape_cast %211 : vector<2xi32> to vector<2x1xi32>
    %c0_i32_62 = arith.constant 0 : i32
    %213 = vector.broadcast %c0_i32_62 : i32 to vector<2x4xi32>
    %214 = arith.select %208, %167, %213 : vector<2x4xi1>, vector<2x4xi32>
    %cst_63 = arith.constant dense<0> : vector<2xi32>
    %215 = vector.multi_reduction <add>, %214, %cst_63 [1] : vector<2x4xi32> to vector<2xi32>
    %216 = vector.shape_cast %215 : vector<2xi32> to vector<2x1xi32>
    %c0_i32_64 = arith.constant 0 : i32
    %217 = vector.broadcast %c0_i32_64 : i32 to vector<2x4xi32>
    %218 = arith.select %208, %168, %217 : vector<2x4xi1>, vector<2x4xi32>
    %cst_65 = arith.constant dense<0> : vector<2xi32>
    %219 = vector.multi_reduction <add>, %218, %cst_65 [1] : vector<2x4xi32> to vector<2xi32>
    %220 = vector.shape_cast %219 : vector<2xi32> to vector<2x1xi32>
    %c0_i32_66 = arith.constant 0 : i32
    %221 = vector.broadcast %c0_i32_66 : i32 to vector<2x4xi32>
    %222 = arith.select %208, %169, %221 : vector<2x4xi1>, vector<2x4xi32>
    %cst_67 = arith.constant dense<0> : vector<2xi32>
    %223 = vector.multi_reduction <add>, %222, %cst_67 [1] : vector<2x4xi32> to vector<2xi32>
    %224 = vector.shape_cast %223 : vector<2xi32> to vector<2x1xi32>
    %225 = tpu.concatenate %184, %188, %192, %196, %212, %216, %220, %224 in 1 : vector<2x1xi32>, vector<2x1xi32>, vector<2x1xi32>, vector<2x1xi32>, vector<2x1xi32>, vector<2x1xi32>, vector<2x1xi32>, vector<2x1xi32> -> vector<2x8xi32>
    %c0_i32_68 = arith.constant 0 : i32
    %226 = vector.broadcast %c0_i32_68 : i32 to vector<2x120xi32>
    %227 = tpu.concatenate %225, %226 in 1 : vector<2x8xi32>, vector<2x120xi32> -> vector<2x128xi32>
    %c0_69 = arith.constant 0 : index
    %c0_70 = arith.constant 0 : index
    %228 = vector.load %arg9[%c0_69, %c0_70] : memref<2x128xi32, #tpu.memory_space<vmem>>, vector<2x128xi32>
    tpu.vector_store %arg9[%c0_69, %c0_70], %227 {strides = array<i32>} : memref<2x128xi32, #tpu.memory_space<vmem>>, vector<2x128xi32>,
    return
  }
  func.func @transform_0(%arg0: i32) -> (i32, i32) {
    %c0_i32 = arith.constant 0 : i32
    %c0_i32_0 = arith.constant 0 : i32
    %c0_i32_1 = arith.constant 0 : i32
    return %c0_i32, %c0_i32_0 : i32, i32
  }
  func.func @transform_1(%arg0: i32) -> (i32, i32) {
    %c0_i32 = arith.constant 0 : i32
    %c0_i32_0 = arith.constant 0 : i32
    %c0_i32_1 = arith.constant 0 : i32
    return %c0_i32, %c0_i32_0 : i32, i32
  }
  func.func @transform_2(%arg0: i32) -> (i32, i32) {
    %c0_i32 = arith.constant 0 : i32
    %c0_i32_0 = arith.constant 0 : i32
    %c0_i32_1 = arith.constant 0 : i32
    return %c0_i32, %c0_i32_0 : i32, i32
  }
  func.func @transform_3(%arg0: i32) -> (i32, i32) {
    %c0_i32 = arith.constant 0 : i32
    %c0_i32_0 = arith.constant 0 : i32
    %c0_i32_1 = arith.constant 0 : i32
    return %c0_i32, %c0_i32_0 : i32, i32
  }
  func.func @transform_4(%arg0: i32) -> (i32, i32) {
    %c0_i32 = arith.constant 0 : i32
    %c0_i32_0 = arith.constant 0 : i32
    %c0_i32_1 = arith.constant 0 : i32
    return %c0_i32, %c0_i32_0 : i32, i32
  }
  func.func @transform_5(%arg0: i32) -> (i32, i32) {
    %c0_i32 = arith.constant 0 : i32
    %c0_i32_0 = arith.constant 0 : i32
    %c0_i32_1 = arith.constant 0 : i32
    return %c0_i32, %c0_i32_0 : i32, i32
  }
  func.func @transform_6(%arg0: i32) -> (i32, i32) {
    %c0_i32 = arith.constant 0 : i32
    %c0_i32_0 = arith.constant 0 : i32
    %c0_i32_1 = arith.constant 0 : i32
    return %c0_i32, %c0_i32_0 : i32, i32
  }
  func.func @transform_7(%arg0: i32) -> (i32, i32) {
    %c0_i32 = arith.constant 0 : i32
    %c0_i32_0 = arith.constant 0 : i32
    %c0_i32_1 = arith.constant 0 : i32
    return %c0_i32, %c0_i32_0 : i32, i32
  }
  func.func @transform_8(%arg0: i32) -> (i32, i32) {
    %c0_i32 = arith.constant 0 : i32
    %c0_i32_0 = arith.constant 0 : i32
    %c0_i32_1 = arith.constant 0 : i32
    return %c0_i32, %c0_i32_0 : i32, i32
  }
}

</mosaic_0001>

<bundles_post_ra>
// kernel: tpu_custom_call.1
= control target key start
LH: loop header
LB: loop body
LE: loop exit
PB: predicated region body
PF: predicated region fallthrough
CT: control target
= control target key end

     0   :  { %s1664_s0 = inlined_call_operand.vmem [shape: f32[2,1024], index: 0, kind: input, shape index: {}]   ;;  %s1665_s1 = inlined_call_operand.vmem [shape: f32[1024,32], index: 1, kind: input, shape index: {}]   ;;  %s1666_s2 = inlined_call_operand.vmem [shape: f32[1,32], index: 2, kind: input, shape index: {}]   ;;  %s1667_s3 = inlined_call_operand.vmem [shape: f32[32,16], index: 3, kind: input, shape index: {}]   ;;  %s1668_s4 = inlined_call_operand.vmem [shape: f32[1,16], index: 4, kind: input, shape index: {}]   ;;  %s1669_s5 = inlined_call_operand.vmem [shape: f32[16,32], index: 5, kind: input, shape index: {}]   ;;  %s1670_s6 = inlined_call_operand.vmem [shape: f32[32,384], index: 6, kind: input, shape index: {}]   ;;  %s1671_s7 = inlined_call_operand.vmem [shape: f32[1,384], index: 7, kind: input, shape index: {}]   ;;  %s1672_s8 = inlined_call_operand.hbm [shape: s32[2,128], index: 8, kind: output, shape index: {}]  }
   0x1   :  { %v79_v0 = vld [vmem:[%s1665_s1 + $0x178] sm:$0xff]  ;;  %v78_v2 = vld [vmem:[%s1665_s1 + $0x170] sm:$0xff]  ;;  %v77_v6 = vld [vmem:[%s1665_s1 + $0x168] sm:$0xff] }
   0x2   :  { %v47_v1 = vld [vmem:[%s1665_s1 + $0x78] sm:$0xff]  ;;  %225 = vmatpush.msra.mxu2 %v79_v0  ;;  %v46_v4 = vld [vmem:[%s1665_s1 + $0x70] sm:$0xff]  ;;  %v45_v8 = vld [vmem:[%s1665_s1 + $0x68] sm:$0xff] }
   0x3   :  { %185 = vmatpush.msra.mxu0 %v47_v1  ;;  %v95_v3 = vld [vmem:[%s1665_s1 + $0x1f8] sm:$0xff]  ;;  %v94_v7 = vld [vmem:[%s1665_s1 + $0x1f0] sm:$0xff]  ;;  %v93_v10 = vld [vmem:[%s1665_s1 + $0x1e8] sm:$0xff] }
   0x4   :  { %v63_v5 = vld [vmem:[%s1665_s1 + $0xf8] sm:$0xff]  ;;  %245 = vmatpush.msra.mxu3 %v95_v3  ;;  %226 = vmatpush.msra.mxu2 %v78_v2  ;;  %v62_v9 = vld [vmem:[%s1665_s1 + $0xf0] sm:$0xff]  ;;  %v76_v11 = vld [vmem:[%s1665_s1 + $0x160] sm:$0xff] }
   0x5   :  { %205 = vmatpush.msra.mxu1 %v63_v5  ;;  %186 = vmatpush.msra.mxu0 %v46_v4  ;;  %v44_v12 = vld [vmem:[%s1665_s1 + $0x60] sm:$0xff]  ;;  %v61_v13 = vld [vmem:[%s1665_s1 + $0xe8] sm:$0xff]  ;;  %v75_v16 = vld [vmem:[%s1665_s1 + $0x158] sm:$0xff] }
   0x6   :  { %246 = vmatpush.msra.mxu3 %v94_v7  ;;  %227 = vmatpush.msra.mxu2 %v77_v6  ;;  %v92_v14 = vld [vmem:[%s1665_s1 + $0x1e0] sm:$0xff]  ;;  %v43_v17 = vld [vmem:[%s1665_s1 + $0x58] sm:$0xff]  ;;  %v74_v20 = vld [vmem:[%s1665_s1 + $0x150] sm:$0xff] }
   0x7   :  { %206 = vmatpush.msra.mxu1 %v62_v9  ;;  %187 = vmatpush.msra.mxu0 %v45_v8  ;;  %v60_v15 = vld [vmem:[%s1665_s1 + $0xe0] sm:$0xff]  ;;  %v91_v18 = vld [vmem:[%s1665_s1 + $0x1d8] sm:$0xff]  ;;  %v42_v21 = vld [vmem:[%s1665_s1 + $0x50] sm:$0xff] }
   0x8   :  { %247 = vmatpush.msra.mxu3 %v93_v10  ;;  %228 = vmatpush.msra.mxu2 %v76_v11  ;;  %v59_v19 = vld [vmem:[%s1665_s1 + $0xd8] sm:$0xff]  ;;  %v90_v22 = vld [vmem:[%s1665_s1 + $0x1d0] sm:$0xff]  ;;  %v73_v24 = vld [vmem:[%s1665_s1 + $0x148] sm:$0xff] }
   0x9   :  { %207 = vmatpush.msra.mxu1 %v61_v13  ;;  %188 = vmatpush.msra.mxu0 %v44_v12  ;;  %v58_v23 = vld [vmem:[%s1665_s1 + $0xd0] sm:$0xff]  ;;  %v41_v25 = vld [vmem:[%s1665_s1 + $0x48] sm:$0xff]  ;;  %v72_v28 = vld [vmem:[%s1665_s1 + $0x140] sm:$0xff] }
   0xa   :  { %248 = vmatpush.msra.mxu3 %v92_v14  ;;  %229 = vmatpush.msra.mxu2 %v75_v16  ;;  %v89_v26 = vld [vmem:[%s1665_s1 + $0x1c8] sm:$0xff]  ;;  %v40_v29 = vld [vmem:[%s1665_s1 + $0x40] sm:$0xff]  ;;  %v71_v32 = vld [vmem:[%s1665_s1 + $0x138] sm:$0xff] }
   0xb   :  { %208 = vmatpush.msra.mxu1 %v60_v15  ;;  %189 = vmatpush.msra.mxu0 %v43_v17  ;;  %v57_v27 = vld [vmem:[%s1665_s1 + $0xc8] sm:$0xff]  ;;  %v88_v30 = vld [vmem:[%s1665_s1 + $0x1c0] sm:$0xff]  ;;  %v39_v33 = vld [vmem:[%s1665_s1 + $0x38] sm:$0xff] }
   0xc   :  { %249 = vmatpush.msra.mxu3 %v91_v18  ;;  %230 = vmatpush.msra.mxu2 %v74_v20  ;;  %v56_v31 = vld [vmem:[%s1665_s1 + $0xc0] sm:$0xff]  ;;  %v87_v34 = vld [vmem:[%s1665_s1 + $0x1b8] sm:$0xff]  ;;  %v70_v36 = vld [vmem:[%s1665_s1 + $0x130] sm:$0xff] }
   0xd   :  { %209 = vmatpush.msra.mxu1 %v59_v19  ;;  %190 = vmatpush.msra.mxu0 %v42_v21  ;;  %v55_v35 = vld [vmem:[%s1665_s1 + $0xb8] sm:$0xff]  ;;  %v38_v37 = vld [vmem:[%s1665_s1 + $0x30] sm:$0xff]  ;;  %v69_v40 = vld [vmem:[%s1665_s1 + $0x128] sm:$0xff] }
   0xe   :  { %250 = vmatpush.msra.mxu3 %v90_v22  ;;  %231 = vmatpush.msra.mxu2 %v73_v24  ;;  %v86_v38 = vld [vmem:[%s1665_s1 + $0x1b0] sm:$0xff]  ;;  %v37_v41 = vld [vmem:[%s1665_s1 + $0x28] sm:$0xff]  ;;  %v68_v44 = vld [vmem:[%s1665_s1 + $0x120] sm:$0xff] }
   0xf   :  { %210 = vmatpush.msra.mxu1 %v58_v23  ;;  %191 = vmatpush.msra.mxu0 %v41_v25  ;;  %v54_v39 = vld [vmem:[%s1665_s1 + $0xb0] sm:$0xff]  ;;  %v85_v42 = vld [vmem:[%s1665_s1 + $0x1a8] sm:$0xff]  ;;  %v36_v45 = vld [vmem:[%s1665_s1 + $0x20] sm:$0xff] }
  0x10   :  { %251 = vmatpush.msra.mxu3 %v89_v26  ;;  %232 = vmatpush.msra.mxu2 %v72_v28  ;;  %v53_v43 = vld [vmem:[%s1665_s1 + $0xa8] sm:$0xff]  ;;  %v84_v46 = vld [vmem:[%s1665_s1 + $0x1a0] sm:$0xff]  ;;  %v67_v48 = vld [vmem:[%s1665_s1 + $0x118] sm:$0xff] }
  0x11   :  { %211 = vmatpush.msra.mxu1 %v57_v27  ;;  %192 = vmatpush.msra.mxu0 %v40_v29  ;;  %v52_v47 = vld [vmem:[%s1665_s1 + $0xa0] sm:$0xff]  ;;  %v35_v49 = vld [vmem:[%s1665_s1 + $0x18] sm:$0xff]  ;;  %v66_v52 = vld [vmem:[%s1665_s1 + $0x110] sm:$0xff] }
  0x12   :  { %252 = vmatpush.msra.mxu3 %v88_v30  ;;  %233 = vmatpush.msra.mxu2 %v71_v32  ;;  %v83_v50 = vld [vmem:[%s1665_s1 + $0x198] sm:$0xff]  ;;  %v34_v53 = vld [vmem:[%s1665_s1 + $0x10] sm:$0xff]  ;;  %v65_v56 = vld [vmem:[%s1665_s1 + $0x108] sm:$0xff] }
  0x13   :  { %212 = vmatpush.msra.mxu1 %v56_v31  ;;  %193 = vmatpush.msra.mxu0 %v39_v33  ;;  %v51_v51 = vld [vmem:[%s1665_s1 + $0x98] sm:$0xff]  ;;  %v82_v54 = vld [vmem:[%s1665_s1 + $0x190] sm:$0xff]  ;;  %v33_v57 = vld [vmem:[%s1665_s1 + $0x8] sm:$0xff] }
  0x14   :  { %253 = vmatpush.msra.mxu3 %v87_v34  ;;  %234 = vmatpush.msra.mxu2 %v70_v36  ;;  %v50_v55 = vld [vmem:[%s1665_s1 + $0x90] sm:$0xff]  ;;  %v81_v58 = vld [vmem:[%s1665_s1 + $0x188] sm:$0xff]  ;;  %v64_v60 = vld [vmem:[%s1665_s1 + $0x100] sm:$0xff] }
  0x15   :  { %213 = vmatpush.msra.mxu1 %v55_v35  ;;  %194 = vmatpush.msra.mxu0 %v38_v37  ;;  %v49_v59 = vld [vmem:[%s1665_s1 + $0x88] sm:$0xff]  ;;  %v32_v61 = vld [vmem:[%s1665_s1] sm:$0xff]  ;;  %v143_v62 = vld [vmem:[%s1665_s1 + $0x378] sm:$0xff] }
  0x16   :  { %254 = vmatpush.msra.mxu3 %v86_v38  ;;  %235 = vmatpush.msra.mxu2 %v69_v40  ;;  %v80_v63 = vld [vmem:[%s1665_s1 + $0x180] sm:$0xff]  ;;  %v111_v0 = vld [vmem:[%s1665_s1 + $0x278] sm:$0xff]  ;;  %v142_v2 = vld [vmem:[%s1665_s1 + $0x370] sm:$0xff] }
  0x17   :  { %214 = vmatpush.msra.mxu1 %v54_v39  ;;  %195 = vmatpush.msra.mxu0 %v37_v41  ;;  %v159_v1 = vld [vmem:[%s1665_s1 + $0x3f8] sm:$0xff]  ;;  %v48_v3 = vld [vmem:[%s1665_s1 + $0x80] sm:$0xff]  ;;  %v110_v4 = vld [vmem:[%s1665_s1 + $0x270] sm:$0xff] }
  0x18   :  { %255 = vmatpush.msra.mxu3 %v85_v42  ;;  %236 = vmatpush.msra.mxu2 %v68_v44  ;;  %v127_v5 = vld [vmem:[%s1665_s1 + $0x2f8] sm:$0xff]  ;;  %v141_v6 = vld [vmem:[%s1665_s1 + $0x368] sm:$0xff]  ;;  %v158_v7 = vld [vmem:[%s1665_s1 + $0x3f0] sm:$0xff] }
  0x19   :  { %215 = vmatpush.msra.mxu1 %v53_v43  ;;  %196 = vmatpush.msra.mxu0 %v36_v45  ;;  %v109_v8 = vld [vmem:[%s1665_s1 + $0x268] sm:$0xff]  ;;  %v126_v9 = vld [vmem:[%s1665_s1 + $0x2f0] sm:$0xff]  ;;  %v140_v10 = vld [vmem:[%s1665_s1 + $0x360] sm:$0xff] }
  0x1a   :  { %256 = vmatpush.msra.mxu3 %v84_v46  ;;  %237 = vmatpush.msra.mxu2 %v67_v48  ;;  %v157_v11 = vld [vmem:[%s1665_s1 + $0x3e8] sm:$0xff]  ;;  %v108_v12 = vld [vmem:[%s1665_s1 + $0x260] sm:$0xff]  ;;  %v139_v15 = vld [vmem:[%s1665_s1 + $0x358] sm:$0xff] }
  0x1b   :  { %216 = vmatpush.msra.mxu1 %v52_v47  ;;  %197 = vmatpush.msra.mxu0 %v35_v49  ;;  %v125_v13 = vld [vmem:[%s1665_s1 + $0x2e8] sm:$0xff]  ;;  %v30_v14 = vld [vmem:[%s1664_s0] sm:$0xff]  ;;  %v107_v17 = vld [vmem:[%s1665_s1 + $0x258] sm:$0xff] }
  0x1c   :  { %257 = vmatpush.msra.mxu3 %v83_v50  ;;  %238 = vmatpush.msra.mxu2 %v66_v52  ;;  %v156_v16 = vld [vmem:[%s1665_s1 + $0x3e0] sm:$0xff]  ;;  %166 = vst [vmem:[#allocation1] ss:$4 sm:$0xff] %v30_v14  ;;  %v138_v19 = vld [vmem:[%s1665_s1 + $0x350] sm:$0xff]  ;;  %v155_v20 = vld [vmem:[%s1665_s1 + $0x3d8] sm:$0xff] }
  0x1d   :  { %217 = vmatpush.msra.mxu1 %v51_v51  ;;  %198 = vmatpush.msra.mxu0 %v34_v53  ;;  %v124_v18 = vld [vmem:[%s1665_s1 + $0x2e0] sm:$0xff]  ;;  %v106_v21 = vld [vmem:[%s1665_s1 + $0x250] sm:$0xff]  ;;  %v123_v22 = vld [vmem:[%s1665_s1 + $0x2d8] sm:$0xff] }
  0x1e   :  { %258 = vmatpush.msra.mxu3 %v82_v54  ;;  %239 = vmatpush.msra.mxu2 %v65_v56  ;;  %v137_v23 = vld [vmem:[%s1665_s1 + $0x348] sm:$0xff]  ;;  %v154_v24 = vld [vmem:[%s1665_s1 + $0x3d0] sm:$0xff]  ;;  %v136_v28 = vld [vmem:[%s1665_s1 + $0x340] sm:$0xff] }
  0x1f   :  { %218 = vmatpush.msra.mxu1 %v50_v55  ;;  %199 = vmatpush.msra.mxu0 %v33_v57  ;;  %v31_v25 = vld [vmem:[%s1664_s0 + $0x8] sm:$0xff]  ;;  %v122_v27 = vld [vmem:[%s1665_s1 + $0x2d0] sm:$0xff]  ;;  %v104_v30 = vld [vmem:[%s1665_s1 + $0x240] sm:$0xff] }
  0x20   :  { %259 = vmatpush.msra.mxu3 %v81_v58  ;;  %240 = vmatpush.msra.mxu2 %v64_v60  ;;  %v105_v26 = vld [vmem:[%s1665_s1 + $0x248] sm:$0xff]  ;;  %168 = vst [vmem:[#allocation1 + $0x20] ss:$4 sm:$0xff] %v31_v25  ;;  %v135_v32 = vld [vmem:[%s1665_s1 + $0x338] sm:$0xff]  ;;  %v152_v33 = vld [vmem:[%s1665_s1 + $0x3c0] sm:$0xff] }
  0x21   :  { %219 = vmatpush.msra.mxu1 %v49_v59  ;;  %200 = vmatpush.msra.mxu0 %v32_v61  ;;  %v153_v29 = vld [vmem:[%s1665_s1 + $0x3c8] sm:$0xff]  ;;  %v103_v34 = vld [vmem:[%s1665_s1 + $0x238] sm:$0xff]  ;;  %v120_v35 = vld [vmem:[%s1665_s1 + $0x2c0] sm:$0xff] }
  0x22   :  { %305 = vmatpush.msrb.mxu2 %v143_v62  ;;  %260 = vmatpush.msra.mxu3 %v80_v63  ;;  %v121_v31 = vld [vmem:[%s1665_s1 + $0x2c8] sm:$0xff] }
  0x23   :  { %265 = vmatpush.msrb.mxu0 %v111_v0  ;;  %220 = vmatpush.msra.mxu1 %v48_v3 }
  0x24   :  { %325 = vmatpush.msrb.mxu3 %v159_v1  ;;  %306 = vmatpush.msrb.mxu2 %v142_v2 }
  0x25   :  { %266 = vmatpush.msrb.mxu0 %v110_v4  ;;  %285 = vmatpush.msrb.mxu1 %v127_v5 }
  0x26   :  { %307 = vmatpush.msrb.mxu2 %v141_v6  ;;  %326 = vmatpush.msrb.mxu3 %v158_v7 }
  0x27   :  { %267 = vmatpush.msrb.mxu0 %v109_v8  ;;  %286 = vmatpush.msrb.mxu1 %v126_v9 }
  0x28   :  { %308 = vmatpush.msrb.mxu2 %v140_v10  ;;  %327 = vmatpush.msrb.mxu3 %v157_v11 }
  0x29   :  { %268 = vmatpush.msrb.mxu0 %v108_v12  ;;  %287 = vmatpush.msrb.mxu1 %v125_v13 }
  0x2a   :  { %309 = vmatpush.msrb.mxu2 %v139_v15  ;;  %328 = vmatpush.msrb.mxu3 %v156_v16 }
  0x2b   :  { %269 = vmatpush.msrb.mxu0 %v107_v17  ;;  %288 = vmatpush.msrb.mxu1 %v124_v18 }
  0x2c   :  { %310 = vmatpush.msrb.mxu2 %v138_v19  ;;  %329 = vmatpush.msrb.mxu3 %v155_v20 }
  0x2d   :  { %270 = vmatpush.msrb.mxu0 %v106_v21  ;;  %289 = vmatpush.msrb.mxu1 %v123_v22 }
  0x2e   :  { %311 = vmatpush.msrb.mxu2 %v137_v23  ;;  %330 = vmatpush.msrb.mxu3 %v154_v24 }
  0x2f   :  { %271 = vmatpush.msrb.mxu0 %v105_v26  ;;  %290 = vmatpush.msrb.mxu1 %v122_v27 }
  0x30   :  { %312 = vmatpush.msrb.mxu2 %v136_v28  ;;  %331 = vmatpush.msrb.mxu3 %v153_v29 }
  0x31   :  { %13 = vsyncpa [#allocation3], 0  ;;  %272 = vmatpush.msrb.mxu0 %v104_v30  ;;  %291 = vmatpush.msrb.mxu1 %v121_v31  ;;  %v134_v36 = vld [vmem:[%s1665_s1 + $0x330] sm:$0xff]  ;;  %v151_v37 = vld [vmem:[%s1665_s1 + $0x3b8] sm:$0xff]  ;;  %vm354_vm0 = vcmask 261120   ;;  %vm378_vm1 = vcmask 123904  }
  0x32   :  { %313 = vmatpush.msrb.mxu2 %v135_v32  ;;  %332 = vmatpush.msrb.mxu3 %v152_v33  ;;  %v102_v38 = vld [vmem:[%s1665_s1 + $0x230] sm:$0xff]  ;;  %v119_v39 = vld [vmem:[%s1665_s1 + $0x2b8] sm:$0xff]  ;;  %v133_v40 = vld [vmem:[%s1665_s1 + $0x328] sm:$0xff]  ;;  %vm498_vm8 = vcmask 1041408   ;;  %vm730_vm11 = vcmask 7168   ;;  %vm732_vm12 = vcmask 15360  }
  0x33   :  { %273 = vmatpush.msrb.mxu0 %v103_v34  ;;  %292 = vmatpush.msrb.mxu1 %v120_v35  ;;  %v150_v41 = vld [vmem:[%s1665_s1 + $0x3b0] sm:$0xff]  ;;  %v101_v42 = vld [vmem:[%s1665_s1 + $0x228] sm:$0xff]  ;;  %v132_v44 = vld [vmem:[%s1665_s1 + $0x320] sm:$0xff]  ;;  %vm500_vm14 = vcmask 1043456   ;;  %s1003_s28 = smov 2   ;;  %s1004_s29 = smov 1  }
  0x34   :  { %314 = vmatpush.msrb.mxu2 %v134_v36  ;;  %333 = vmatpush.msrb.mxu3 %v151_v37  ;;  %v118_v43 = vld [vmem:[%s1665_s1 + $0x2b0] sm:$0xff]  ;;  %v149_v45 = vld [vmem:[%s1665_s1 + $0x3a8] sm:$0xff]  ;;  %v100_v47 = vld [vmem:[%s1665_s1 + $0x220] sm:$0xff]  ;;  %s1005_s30 = smov [#allocation2]   ;;  %s934_s12 = sshll.u32 %s1672_s8, 4  ;;  %s935_s12 = int_to_ptr.hbm [resolvable:$true] %s934_s12 }
  0x35   :  { %274 = vmatpush.msrb.mxu0 %v102_v38  ;;  %293 = vmatpush.msrb.mxu1 %v119_v39  ;;  %v171_v46 = vld.sshfl [vmem:[#allocation1 + $0x10] sm:$0xff pattern:$0x73625140]  ;;  %v117_v48 = vld [vmem:[%s1665_s1 + $0x2a8] sm:$0xff]  ;;  %v131_v49 = vld [vmem:[%s1665_s1 + $0x318] sm:$0xff]  ;;  %s932_s9 = sshll.u32 %s1005_s30, 4  ;;  %s933_s9 = int_to_ptr.vmem [resolvable:$true] %s932_s9 }
  0x36   :  { %315 = vmatpush.msrb.mxu2 %v133_v40  ;;  %334 = vmatpush.msrb.mxu3 %v150_v41  ;;  %v148_v50 = vld [vmem:[%s1665_s1 + $0x3a0] sm:$0xff]  ;;  %v172_v52 = vld.sshfl [vmem:[#allocation1 + $0x18] sm:$0xff pattern:$0x73625140]  ;;  %v130_v55 = vld [vmem:[%s1665_s1 + $0x310] sm:$0xff] }
  0x37   :  { %275 = vmatpush.msrb.mxu0 %v101_v42  ;;  %294 = vmatpush.msrb.mxu1 %v118_v43  ;;  %v169_v51 = vld.sshfl [vmem:[#allocation1] sm:$0xff pattern:$0x73625140]  ;;  %v99_v53 = vld [vmem:[%s1665_s1 + $0x218] sm:$0xff]  ;;  %v98_v58 = vld [vmem:[%s1665_s1 + $0x210] sm:$0xff] }
  0x38   :  { %316 = vmatpush.msrb.mxu2 %v132_v44  ;;  %335 = vmatpush.msrb.mxu3 %v149_v45  ;;  %v116_v54 = vld [vmem:[%s1665_s1 + $0x2a0] sm:$0xff]  ;;  %v147_v56 = vld [vmem:[%s1665_s1 + $0x398] sm:$0xff]  ;;  %v170_v57 = vld.sshfl [vmem:[#allocation1 + $0x8] sm:$0xff pattern:$0x73625140] }
  0x39   :  { %241 = vmatmul.f32.vlgmr.msra.gmra.mxu2 %v171_v46  ;;  %276 = vmatpush.msrb.mxu0 %v100_v47  ;;  %v115_v59 = vld [vmem:[%s1665_s1 + $0x298] sm:$0xff]  ;;  %v129_v60 = vld [vmem:[%s1665_s1 + $0x308] sm:$0xff]  ;;  %v146_v61 = vld [vmem:[%s1665_s1 + $0x390] sm:$0xff]  ;;  %v392_v47 = vlaneseq }
  0x3a   :  { %295 = vmatpush.msrb.mxu1 %v117_v48  ;;  %317 = vmatpush.msrb.mxu2 %v131_v49  ;;  %v97_v62 = vld [vmem:[%s1665_s1 + $0x208] sm:$0xff]  ;;  %v114_v63 = vld [vmem:[%s1665_s1 + $0x290] sm:$0xff]  ;;  %v128_v0 = vld [vmem:[%s1665_s1 + $0x300] sm:$0xff] }
  0x3b   :  { %336 = vmatpush.msrb.mxu3 %v148_v50  ;;  %201 = vmatmul.f32.vlgmr.msra.gmra.mxu0 %v169_v51  ;;  %v145_v1 = vld [vmem:[%s1665_s1 + $0x388] sm:$0xff]  ;;  %v175_v2 = vld.sshfl [vmem:[#allocation1 + $0x30] sm:$0xff pattern:$0x73625140]  ;;  %v96_v3 = vld [vmem:[%s1665_s1 + $0x200] sm:$0xff]  ;;  %v1466_v48 = vand.u32 127, %v392_v47 }
  0x3c   :  { %261 = vmatmul.f32.vlgmr.msra.gmra.mxu3 %v172_v52  ;;  %277 = vmatpush.msrb.mxu0 %v99_v53  ;;  %v113_v4 = vld [vmem:[%s1665_s1 + $0x288] sm:$0xff]  ;;  %v144_v5 = vld [vmem:[%s1665_s1 + $0x380] sm:$0xff]  ;;  %v176_v7 = vld.sshfl [vmem:[#allocation1 + $0x38] sm:$0xff pattern:$0x73625140] }
  0x3d   :  { %296 = vmatpush.msrb.mxu1 %v116_v54  ;;  %318 = vmatpush.msrb.mxu2 %v130_v55  ;;  %v173_v6 = vld.sshfl [vmem:[#allocation1 + $0x20] sm:$0xff pattern:$0x73625140]  ;;  %v174_v9 = vld.sshfl [vmem:[#allocation1 + $0x28] sm:$0xff pattern:$0x73625140] }
  0x3e   :  { %337 = vmatpush.msrb.mxu3 %v147_v56  ;;  %221 = vmatmul.f32.vlgmr.msra.gmra.mxu1 %v170_v57  ;;  %v112_v8 = vld [vmem:[%s1665_s1 + $0x280] sm:$0xff]  ;;  %v349_v10 = vld [vmem:[%s1667_s3 + $0x18] sm:$0xff]  ;;  %v348_v11 = vld [vmem:[%s1667_s3 + $0x10] sm:$0xff] }
  0x3f   :  { %278 = vmatpush.msrb.mxu0 %v98_v58  ;;  %297 = vmatpush.msrb.mxu1 %v115_v59  ;;  %v347_v12 = vld [vmem:[%s1667_s3 + $0x8] sm:$0xff]  ;;  %v346_v13 = vld [vmem:[%s1667_s3] sm:$0xff] }
  0x40   :  { %319 = vmatpush.msrb.mxu2 %v129_v60  ;;  %338 = vmatpush.msrb.mxu3 %v146_v61  ;;  %v957_v14 = vld [vmem:[%s1666_s2] ss:$0 sm:$0xff] }
  0x41   :  { %279 = vmatpush.msrb.mxu0 %v97_v62  ;;  %298 = vmatpush.msrb.mxu1 %v114_v63  ;;  %v958_v32 = vld [vmem:[%s1668_s4] ss:$0 sm:$0xff] }
  0x42   :  { %320 = vmatpush.msrb.mxu2 %v128_v0  ;;  %339 = vmatpush.msrb.mxu3 %v145_v1 }
  0x43   :  { %321 = vmatmul.f32.vlgmr.msrb.gmra.mxu2 %v175_v2  ;;  %280 = vmatpush.msrb.mxu0 %v96_v3 }
  0x44   :  { %299 = vmatpush.msrb.mxu1 %v113_v4  ;;  %340 = vmatpush.msrb.mxu3 %v144_v5 }
  0x45   :  { %281 = vmatmul.f32.vlgmr.msrb.gmra.mxu0 %v173_v6  ;;  %341 = vmatmul.f32.vlgmr.msrb.gmra.mxu3 %v176_v7 }
  0x46   :  { %300 = vmatpush.msrb.mxu1 %v112_v8  ;;  %370 = vmatpush.msra.mxu0 %v349_v10 }
  0x47   :  { %301 = vmatmul.f32.vlgmr.msrb.gmra.mxu1 %v174_v9 }
  0x48   :  { %371 = vmatpush.msra.mxu0 %v348_v11 }
  0x4a   :  { %372 = vmatpush.msra.mxu0 %v347_v12 }
  0x4c   :  { %373 = vmatpush.msra.mxu0 %v346_v13 }
  0xb8   :  { %v202_v15 = vpop.f32.mrf.mxu0 }
  0xb9   :  { %v203_v16 = vadd.f32 %v957_v14, %v202_v15 }
  0xbb   :  { %v222_v17 = vpop.f32.mrf.mxu1 }
  0xbc   :  { %v223_v18 = vadd.f32 %v222_v17, %v203_v16  ;;  %v242_v19 = vpop.f32.mrf.mxu2  ;;  %v1001_v16 = vmov 0.0  }
  0xbe   :  { %v243_v20 = vadd.f32 %v242_v19, %v223_v18 }
  0xbf   :  { %v262_v21 = vpop.f32.mrf.mxu3 }
  0xc0   :  { %v263_v22 = vadd.f32 %v262_v21, %v243_v20 }
  0xc2   :  { %v282_v23 = vpop.f32.mrf.mxu0 }
  0xc3   :  { %v283_v24 = vadd.f32 %v282_v23, %v263_v22 }
  0xc4   :  { %v302_v25 = vpop.f32.mrf.mxu1 }
  0xc5   :  { %v303_v26 = vadd.f32 %v302_v25, %v283_v24 }
  0xc6   :  { %v322_v27 = vpop.f32.mrf.mxu2 }
  0xc7   :  { %v323_v28 = vadd.f32 %v322_v27, %v303_v26 }
  0xc8   :  { %v342_v29 = vpop.f32.mrf.mxu3 }
  0xc9   :  { %v343_v30 = vadd.f32 %v342_v29, %v323_v28 }
  0xcb   :  { %v1456_v31 = vmax.f32 %v343_v30, 0.0 }
  0xcd   :  { %943 = vmatmul.msk.f32.vlgmr.msra.gmra.mxu0 %vm354_vm0, %v1456_v31 }
 0x14a   :  { %v375_v33 = vpop.f32.mrf.mxu0 }
 0x14b   :  { %v376_v34 = vadd.f32 %v958_v32, %v375_v33 }
 0x14d   :  { %v379_v35 = vsel %vm378_vm1, %v376_v34, -inf }
 0x14e   :  { %380 = vmax.xlane.f32.xlu0 %v379_v35 }
 0x1c1   :  { %v381_v36 = vpop.xlane.xlu0 %380 }
 0x1c2   :  { %v382_v37 = vsub.f32 %v376_v34, %v381_v36 }
 0x1c4   :  { %v383_v38 = vmul.f32 1.442695, %v382_v37 }
 0x1c6   :  { %959 = vpow2.f32 %v383_v38 }
 0x1cc   :  { %v960_v39 = vpop.eup %959 }
 0x1cd   :  { %v385_v40 = vsel %vm378_vm1, %v960_v39, 0.0 }
 0x1ce   :  { %386 = vadd.xlane.f32.xlu0 %v385_v40 }
 0x241   :  { %v387_v41 = vpop.xlane.xlu0 %386 }
 0x242   :  { %961 = vlog2.f32 %v387_v41 }
 0x248   :  { %v962_v42 = vpop.eup %961 }
 0x249   :  { %v389_v43 = vmul.f32 0.6931472, %v962_v42 }
 0x24b   :  { %v390_v44 = vadd.f32 %v389_v43, %v381_v36 }
 0x24d   :  { %v391_v45 = vsub.f32 %v376_v34, %v390_v44 }
 0x24f   :  { %v394_v46 = vsel %vm378_vm1, %v391_v45, -inf }
 0x250   :  { %395 = vmax.xlane.f32.xlu1 %v394_v46 }
 0x2c3   :  { %v1468_v49 = vpop.xlane.xlu1 %395 }
 0x2c4   :  { %vm397_vm2 = vcmp.eq.f32.partialorder %v391_v45, %v1468_v49 }
 0x2c5   :  { %v398_v50 = vsel %vm397_vm2, %v1466_v48, 16 }
 0x2c6   :  { %v399_v51 = vsel %vm378_vm1, %v398_v50, 2147483647 }
 0x2c7   :  { %v401_v52 = vshra.s32 %v399_v51, 16  ;;  %v400_v54 = vand.u32 65535, %v399_v51 }
 0x2c9   :  { %v403_v53 = vcvt.s32.f32 %v401_v52  ;;  %v402_v56 = vcvt.s32.f32 %v400_v54 }
 0x2cb   :  { %404 = vmin.xlane.f32.xlu1 %v403_v53 }
 0x33e   :  { %v405_v55 = vpop.xlane.xlu1 %404 }
 0x33f   :  { %vm406_vm3 = vcmp.eq.f32.partialorder %v403_v53, %v405_v55  ;;  %v411_v58 = vcvt.f32.s32 %v405_v55  ;;  %v505_v55 = vld [vmem:[%s1669_s5 + $0x8] sm:$0xff] }
 0x340   :  { %v407_v57 = vsel %vm406_vm3, %v402_v56, inf  ;;  %524 = vmatpush.msra.mxu1 %v505_v55  ;;  %v504_v56 = vld [vmem:[%s1669_s5] sm:$0xff] }
 0x341   :  { %408 = vmin.xlane.f32.xlu2 %v407_v57  ;;  %v412_v60 = vshll.u32 %v411_v58, 16  ;;  %v549_v57 = vld [vmem:[%s1670_s6 + $0x48] sm:$0xff]  ;;  %v550_v58 = vld [vmem:[%s1670_s6 + $0x50] sm:$0xff] }
 0x342   :  { %525 = vmatpush.msra.mxu1 %v504_v56  ;;  %575 = vmatpush.msra.mxu2 %v549_v57 }
 0x343   :  { %595 = vmatpush.msra.mxu3 %v550_v58 }
 0x3b4   :  { %v409_v59 = vpop.xlane.xlu2 %408 }
 0x3b5   :  { %v410_v61 = vcvt.f32.s32 %v409_v59  ;;  %v551_v59 = vld [vmem:[%s1670_s6 + $0x58] sm:$0xff] }
 0x3b6   :  { %615 = vmatpush.msrb.mxu0 %v551_v59 }
 0x3b7   :  { %v413_v62 = vadd.s32 %v412_v60, %v410_v61  ;;  %v546_v60 = vld [vmem:[%s1670_s6 + $0x30] sm:$0xff]  ;;  %v547_v61 = vld [vmem:[%s1670_s6 + $0x38] sm:$0xff] }
 0x3b8   :  { %576 = vmatpush.msra.mxu2 %v546_v60  ;;  %596 = vmatpush.msra.mxu3 %v547_v61 }
 0x3b9   :  { %vm414_vm4 = vcmp.eq.s32.totalorder %v1466_v48, %v413_v62 }
 0x3ba   :  { %v417_v63 = vsel %vm414_vm4, -1e+30, %v391_v45  ;;  %v944_v20 = vsel %vm414_vm4, 1.0, %v1001_v16  ;;  %vm506_vm4 = vcmask 130048  }
 0x3bb   :  { %v418_v0 = vsel %vm378_vm1, %v417_v63, -inf }
 0x3bc   :  { %419 = vmax.xlane.f32.xlu2 %v418_v0  ;;  %v544_v0 = vld [vmem:[%s1670_s6 + $0x20] sm:$0xff] }
 0x3bd   :  { %597 = vmatpush.msra.mxu3 %v544_v0 }
 0x42f   :  { %v1477_v1 = vpop.xlane.xlu2 %419 }
 0x430   :  { %vm421_vm5 = vcmp.eq.f32.partialorder %v417_v63, %v1477_v1 }
 0x431   :  { %v422_v2 = vsel %vm421_vm5, %v1466_v48, 16  ;;  %vm502_vm5 = vcmask 1045504  }
 0x432   :  { %v423_v3 = vsel %vm378_vm1, %v422_v2, 2147483647 }
 0x433   :  { %v425_v4 = vshra.s32 %v423_v3, 16  ;;  %v424_v6 = vand.u32 65535, %v423_v3 }
 0x435   :  { %v427_v5 = vcvt.s32.f32 %v425_v4  ;;  %v426_v8 = vcvt.s32.f32 %v424_v6 }
 0x437   :  { %428 = vmin.xlane.f32.xlu0 %v427_v5 }
 0x4aa   :  { %v429_v7 = vpop.xlane.xlu0 %428 }
 0x4ab   :  { %vm430_vm6 = vcmp.eq.f32.partialorder %v427_v5, %v429_v7  ;;  %v435_v10 = vcvt.f32.s32 %v429_v7 }
 0x4ac   :  { %v431_v9 = vsel %vm430_vm6, %v426_v8, inf }
 0x4ad   :  { %432 = vmin.xlane.f32.xlu1 %v431_v9  ;;  %v436_v12 = vshll.u32 %v435_v10, 16 }
 0x520   :  { %v433_v11 = vpop.xlane.xlu1 %432 }
 0x521   :  { %v434_v13 = vcvt.f32.s32 %v433_v11  ;;  %v545_v11 = vld [vmem:[%s1670_s6 + $0x28] sm:$0xff] }
 0x523   :  { %v437_v14 = vadd.s32 %v436_v12, %v434_v13  ;;  %v540_v12 = vld [vmem:[%s1670_s6] sm:$0xff]  ;;  %v541_v13 = vld [vmem:[%s1670_s6 + $0x8] sm:$0xff] }
 0x524   :  { %598 = vmatpush.msra.mxu3 %v541_v13 }
 0x525   :  { %vm438_vm7 = vcmp.eq.s32.totalorder %v1466_v48, %v437_v14  ;;  %v736_v37 = vsel %vm730_vm11, %v413_v62, %v437_v14  ;;  %v548_v62 = vld [vmem:[%s1670_s6 + $0x40] sm:$0xff]  ;;  %v542_v14 = vld [vmem:[%s1670_s6 + $0x10] sm:$0xff] }
 0x526   :  { %v441_v15 = vsel %vm438_vm7, -1e+30, %v417_v63  ;;  %v945_v17 = vsel %vm438_vm7, 1.0, %v1001_v16  ;;  %v543_v63 = vld [vmem:[%s1670_s6 + $0x18] sm:$0xff]  ;;  %616 = vmatpush.msrb.mxu0 %v548_v62 }
 0x527   :  { %v442_v18 = vsel %vm378_vm1, %v441_v15, -inf  ;;  %v490_v19 = vrot.slane %v945_v17, 6  ;;  %577 = vmatpush.msra.mxu2 %v543_v63 }
 0x528   :  { %443 = vmax.xlane.f32.xlu2 %v442_v18  ;;  %617 = vmatpush.msrb.mxu0 %v545_v11 }
 0x529   :  { %v499_v21 = vsel %vm498_vm8, %v944_v20, %v490_v19  ;;  %578 = vmatpush.msra.mxu2 %v540_v12  ;;  %v534_v19 = vrot.slane %v1456_v31, 2 }
 0x52a   :  { %618 = vmatpush.msrb.mxu0 %v542_v14 }
 0x59b   :  { %v1489_v22 = vpop.xlane.xlu2 %443 }
 0x59c   :  { %vm445_vm9 = vcmp.eq.f32.partialorder %v441_v15, %v1489_v22 }
 0x59d   :  { %v446_v23 = vsel %vm445_vm9, %v1466_v48, 16 }
 0x59e   :  { %v447_v24 = vsel %vm378_vm1, %v446_v23, 2147483647 }
 0x59f   :  { %v449_v25 = vshra.s32 %v447_v24, 16  ;;  %v448_v27 = vand.u32 65535, %v447_v24  ;;  %v552_v24 = vld [vmem:[%s1671_s7] sm:$0x7]  ;;  %s1002_s7 = smov 3  }
 0x5a1   :  { %v451_v26 = vcvt.s32.f32 %v449_v25  ;;  %v450_v29 = vcvt.s32.f32 %v448_v27  ;;  %v556_v25 = vperm.slane %v552_v24, 2 }
 0x5a3   :  { %452 = vmin.xlane.f32.xlu0 %v451_v26 }
 0x616   :  { %v453_v28 = vpop.xlane.xlu0 %452 }
 0x617   :  { %vm454_vm10 = vcmp.eq.f32.partialorder %v451_v26, %v453_v28  ;;  %v459_v32 = vcvt.f32.s32 %v453_v28  ;;  %v554_v28 = vperm.slane %v552_v24, 0 }
 0x618   :  { %v455_v30 = vsel %vm454_vm10, %v450_v29, inf }
 0x619   :  { %456 = vmin.xlane.f32.xlu1 %v455_v30  ;;  %v460_v34 = vshll.u32 %v459_v32, 16 }
 0x68c   :  { %v457_v33 = vpop.xlane.xlu1 %456 }
 0x68d   :  { %v458_v35 = vcvt.f32.s32 %v457_v33 }
 0x68f   :  { %v461_v36 = vadd.s32 %v460_v34, %v458_v35 }
 0x691   :  { %v737_v38 = vsel %vm732_vm12, %v736_v37, %v461_v36  ;;  %vm462_vm13 = vcmp.eq.s32.totalorder %v1466_v48, %v461_v36 }
 0x692   :  { %v465_v39 = vsel %vm462_vm13, -1e+30, %v441_v15  ;;  %v946_v40 = vsel %vm462_vm13, 1.0, %v1001_v16  ;;  %v530_v15 = vrot.slane %v1456_v31, 6 }
 0x693   :  { %v466_v41 = vsel %vm378_vm1, %v465_v39, -inf  ;;  %v493_v42 = vrot.slane %v946_v40, 4 }
 0x694   :  { %467 = vmax.xlane.f32.xlu2 %v466_v41  ;;  %v536_v17 = vsel %vm498_vm8, %v1456_v31, %v530_v15 }
 0x695   :  { %v501_v43 = vsel %vm500_vm14, %v499_v21, %v493_v42 }
 0x707   :  { %v1500_v44 = vpop.xlane.xlu2 %467 }
 0x708   :  { %vm469_vm15 = vcmp.eq.f32.partialorder %v465_v39, %v1500_v44 }
 0x709   :  { %v470_v45 = vsel %vm469_vm15, %v1466_v48, 16 }
 0x70a   :  { %v471_v46 = vsel %vm378_vm1, %v470_v45, 2147483647  ;;  %vm734_vm1 = vcmask 23552  }
 0x70b   :  { %v473_v47 = vshra.s32 %v471_v46, 16  ;;  %v472_v51 = vand.u32 65535, %v471_v46 }
 0x70d   :  { %v475_v50 = vcvt.s32.f32 %v473_v47  ;;  %v474_v53 = vcvt.s32.f32 %v472_v51 }
 0x70f   :  { %476 = vmin.xlane.f32.xlu0 %v475_v50 }
 0x782   :  { %v477_v52 = vpop.xlane.xlu0 %476 }
 0x783   :  { %vm478_vm2 = vcmp.eq.f32.partialorder %v475_v50, %v477_v52  ;;  %v483_v2 = vcvt.f32.s32 %v477_v52 }
 0x784   :  { %v479_v54 = vsel %vm478_vm2, %v474_v53, inf }
 0x785   :  { %480 = vmin.xlane.f32.xlu1 %v479_v54  ;;  %v484_v4 = vshll.u32 %v483_v2, 16 }
 0x7f8   :  { %v481_v3 = vpop.xlane.xlu1 %480 }
 0x7f9   :  { %v482_v5 = vcvt.f32.s32 %v481_v3 }
 0x7fb   :  { %v485_v6 = vadd.s32 %v484_v4, %v482_v5 }
 0x7fd   :  { %vm486_vm3 = vcmp.eq.s32.totalorder %v1466_v48, %v485_v6  ;;  %v1537_v7 = vsel %vm734_vm1, %v737_v38, %v485_v6 }
 0x7fe   :  { %v947_v8 = vsel %vm486_vm3, 1.0, %v1001_v16  ;;  %v532_v16 = vrot.slane %v1456_v31, 4  ;;  %v555_v31 = vperm.slane %v552_v24, 1 }
 0x7ff   :  { %v496_v9 = vrot.slane %v947_v8, 2 }
 0x800   :  { %v537_v18 = vsel %vm500_vm14, %v536_v17, %v532_v16 }
 0x801   :  { %v503_v10 = vsel %vm502_vm5, %v501_v43, %v496_v9  ;;  %v538_v21 = vsel %vm502_vm5, %v537_v18, %v534_v19 }
 0x802   :  { %948 = vmatmul.msk.f32.vlgmr.msra.gmra.mxu1 %vm506_vm4, %v503_v10 }
 0x87f   :  { %v527_v20 = vpop.f32.mrf.mxu1 }
 0x880   :  { %v539_v23 = vadd.f32 %v538_v21, %v527_v20 }
 0x882   :  { %949 = vmatmul.msk.f32.vlgmr.msra.gmra.mxu2 %vm354_vm0, %v539_v23  ;;  %950 = vmatmul.msk.f32.vlgmr.msra.gmra.mxu3 %vm354_vm0, %v539_v23 }
 0x883   :  { %951 = vmatmul.msk.f32.vlgmr.msrb.gmra.mxu0 %vm354_vm0, %v539_v23  ;;  %vm757_vm0 = vcmask 25600  }
 0x900   :  { %v620_v26 = vpop.f32.mrf.mxu0 }
 0x901   :  { %v1566_v27 = vadd.f32 %v620_v26, %v556_v25 }
 0x903   :  { %679 = vmax.xlane.f32.xlu1 %v1566_v27 }
 0x905   :  { %v580_v29 = vpop.f32.mrf.mxu2  ;;  %v600_v30 = vpop.f32.mrf.mxu3 }
 0x906   :  { %v1569_v32 = vadd.f32 %v580_v29, %v554_v28  ;;  %v1571_v33 = vadd.f32 %v600_v30, %v555_v31 }
 0x908   :  { %651 = vmax.xlane.f32.xlu0 %v1571_v33  ;;  %623 = vmax.xlane.f32.xlu2 %v1569_v32 }
 0x976   :  { %v1575_v34 = vpop.xlane.xlu1 %679 }
 0x977   :  { %v681_v35 = vsub.f32 %v1566_v27, %v1575_v34  ;;  %vm691_vm8 = vcmp.eq.f32.partialorder %v1566_v27, %v1575_v34 }
 0x978   :  { %v692_v28 = vsel %vm691_vm8, %v1466_v48, 128 }
 0x979   :  { %v682_v36 = vmul.f32 1.442695, %v681_v35  ;;  %v694_v31 = vshra.s32 %v692_v28, 16 }
 0x97b   :  { %v1579_v37 = vpop.xlane.xlu0 %651  ;;  %v1581_v38 = vpop.xlane.xlu2 %623  ;;  %963 = vpow2.f32 %v682_v36  ;;  %v696_v29 = vcvt.s32.f32 %v694_v31 }
 0x97c   :  { %v653_v39 = vsub.f32 %v1571_v33, %v1579_v37  ;;  %v625_v40 = vsub.f32 %v1569_v32, %v1581_v38  ;;  %vm635_vm7 = vcmp.eq.f32.partialorder %v1569_v32, %v1581_v38  ;;  %vm663_vm10 = vcmp.eq.f32.partialorder %v1571_v33, %v1579_v37 }
 0x97d   :  { %v636_v19 = vsel %vm635_vm7, %v1466_v48, 128  ;;  %vm922_vm7 = vcmask 56320  }
 0x97e   :  { %v654_v41 = vmul.f32 1.442695, %v653_v39  ;;  %v626_v42 = vmul.f32 1.442695, %v625_v40  ;;  %v638_v20 = vshra.s32 %v636_v19, 16  ;;  %v664_v40 = vsel %vm663_vm10, %v1466_v48, 128 }
 0x980   :  { %965 = vpow2.f32 %v654_v41  ;;  %v640_v21 = vcvt.s32.f32 %v638_v20  ;;  %v666_v41 = vshra.s32 %v664_v40, 16 }
 0x981   :  { %v964_v43 = vpop.eup %963  ;;  %967 = vpow2.f32 %v626_v42 }
 0x982   :  { %684 = vadd.xlane.f32.xlu1 %v964_v43  ;;  %v668_v42 = vcvt.s32.f32 %v666_v41 }
 0x986   :  { %v966_v45 = vpop.eup %965 }
 0x987   :  { %v968_v46 = vpop.eup %967  ;;  %656 = vadd.xlane.f32.xlu0 %v966_v45  ;;  %v637_v45 = vand.u32 65535, %v636_v19 }
 0x988   :  { %628 = vadd.xlane.f32.xlu2 %v968_v46 }
 0x989   :  { %v639_v33 = vcvt.s32.f32 %v637_v45 }
 0x9f5   :  { %v685_v47 = vpop.xlane.xlu1 %684 }
 0x9f6   :  { %969 = vlog2.f32 %v685_v47 }
 0x9fa   :  { %v657_v50 = vpop.xlane.xlu0 %656 }
 0x9fb   :  { %971 = vlog2.f32 %v657_v50  ;;  %v629_v51 = vpop.xlane.xlu2 %628 }
 0x9fc   :  { %973 = vlog2.f32 %v629_v51  ;;  %v970_v52 = vpop.eup %969 }
 0x9fd   :  { %v687_v54 = vmul.f32 0.6931472, %v970_v52  ;;  %v665_v52 = vand.u32 65535, %v664_v40 }
 0x9ff   :  { %v688_v59 = vadd.f32 %v687_v54, %v1575_v34 }
 0xa01   :  { %v972_v53 = vpop.eup %971  ;;  %v689_v63 = vsub.f32 %v1575_v34, %v688_v59 }
 0xa02   :  { %v974_v55 = vpop.eup %973  ;;  %v659_v56 = vmul.f32 0.6931472, %v972_v53 }
 0xa03   :  { %v631_v57 = vmul.f32 0.6931472, %v974_v55 }
 0xa04   :  { %v660_v58 = vadd.f32 %v659_v56, %v1579_v37  ;;  %v667_v56 = vcvt.s32.f32 %v665_v52 }
 0xa05   :  { %v632_v60 = vadd.f32 %v631_v57, %v1581_v38 }
 0xa06   :  { %v661_v61 = vsub.f32 %v1579_v37, %v660_v58  ;;  %v693_v58 = vand.u32 65535, %v692_v28 }
 0xa07   :  { %v633_v62 = vsub.f32 %v1581_v38, %v632_v60 }
 0xa09   :  { %v662_v0 = vadd.f32 %v661_v61, %v633_v62  ;;  %v695_v62 = vcvt.s32.f32 %v693_v58 }
 0xa0b   :  { %v690_v2 = vadd.f32 %v689_v63, %v662_v0 }
 0xa0d   :  { %v715_v3 = vrot.slane %v690_v2, 6  ;;  %v712_v4 = vrot.slane %v690_v2, 4  ;;  %v709_v5 = vrot.slane %v690_v2, 2  ;;  %v707_v11 = vadd.f32 %v690_v2, %v1468_v49 }
 0xa0f   :  { %v717_v6 = vadd.f32 %v715_v3, %v1500_v44  ;;  %v714_v8 = vadd.f32 %v712_v4, %v1489_v22  ;;  %v711_v9 = vadd.f32 %v709_v5, %v1477_v1 }
 0xa11   :  { %727 = vrot.lane.b32.xlu1 %v717_v6, %s1002_s7  ;;  %723 = vrot.lane.b32.xlu0 %v714_v8, %s1003_s28 }
 0xa12   :  { %719 = vrot.lane.b32.xlu2 %v711_v9, %s1004_s29 }
 0xa6c   :  { %v720_v10 = vpop.permute.xlu2 %719 }
 0xa6d   :  { %v731_v12 = vsel %vm730_vm11, %v707_v11, %v720_v10 }
 0xa83   :  { %v728_v13 = vpop.permute.xlu1 %727  ;;  %v724_v14 = vpop.permute.xlu0 %723 }
 0xa84   :  { %v733_v44 = vsel %vm732_vm12, %v731_v12, %v724_v14 }
 0xa85   :  { %v735_v22 = vsel %vm734_vm1, %v733_v44, %v728_v13 }
 0xa86   :  { %v758_v1 = vsel %vm757_vm0, %v735_v22, -inf }
 0xa87   :  { %759 = vmax.xlane.f32.xlu2 %v758_v1 }
 0xafa   :  { %v760_v15 = vpop.xlane.xlu2 %759 }
 0xafb   :  { %vm761_vm6 = vcmp.eq.f32.partialorder %v735_v22, %v760_v15 }
 0xafc   :  { %v762_v16 = vsel %vm761_vm6, %v1466_v48, 4  ;;  %vm918_vm6 = vcmask 39936  }
 0xafd   :  { %v763_v17 = vsel %vm757_vm0, %v762_v16, 2147483647 }
 0xafe   :  { %v765_v18 = vshra.s32 %v763_v17, 16  ;;  %v764_v23 = vand.u32 65535, %v763_v17 }
 0xb00   :  { %v767_v49 = vcvt.s32.f32 %v765_v18  ;;  %v766_v25 = vcvt.s32.f32 %v764_v23 }
 0xb02   :  { %768 = vmin.xlane.f32.xlu0 %v767_v49 }
 0xb0a   :  { %641 = vmin.xlane.f32.xlu0 %v640_v21 }
 0xb75   :  { %v769_v24 = vpop.xlane.xlu0 %768 }
 0xb76   :  { %vm770_vm9 = vcmp.eq.f32.partialorder %v767_v49, %v769_v24  ;;  %v775_v30 = vcvt.f32.s32 %v769_v24 }
 0xb77   :  { %v771_v26 = vsel %vm770_vm9, %v766_v25, inf }
 0xb78   :  { %772 = vmin.xlane.f32.xlu1 %v771_v26  ;;  %v776_v35 = vshll.u32 %v775_v30, 16 }
 0xb7d   :  { %v642_v43 = vpop.xlane.xlu0 %641 }
 0xb7e   :  { %vm643_vm14 = vcmp.eq.f32.partialorder %v640_v21, %v642_v43  ;;  %v648_v61 = vcvt.f32.s32 %v642_v43 }
 0xb7f   :  { %v644_v37 = vsel %vm643_vm14, %v639_v33, inf }
 0xb80   :  { %697 = vmin.xlane.f32.xlu1 %v696_v29  ;;  %v649_v3 = vshll.u32 %v648_v61, 16 }
 0xbeb   :  { %v773_v32 = vpop.xlane.xlu1 %772 }
 0xbec   :  { %v774_v36 = vcvt.f32.s32 %v773_v32 }
 0xbee   :  { %v777_v38 = vadd.s32 %v776_v35, %v774_v36 }
 0xbf0   :  { %vm1612_vm13 = vcmp.eq.s32.totalorder %v1466_v48, %v777_v38 }
 0xbf1   :  { %v835_v34 = vsel %vm1612_vm13, -1e+30, %v735_v22  ;;  %v779_v54 = vsel %vm1612_vm13, %v1537_v7, 0 }
 0xbf2   :  { %v836_v39 = vsel %vm757_vm0, %v835_v34, -inf  ;;  %v780_v60 = vsel %vm757_vm0, %v779_v54, 0 }
 0xbf3   :  { %837 = vmax.xlane.f32.xlu2 %v836_v39  ;;  %v698_v57 = vpop.xlane.xlu1 %697  ;;  %v782_v63 = vshrl.u32 %v780_v60, 16  ;;  %v781_v10 = vand.u32 65535, %v780_v60 }
 0xbf4   :  { %vm699_vm3 = vcmp.eq.f32.partialorder %v696_v29, %v698_v57  ;;  %v704_v28 = vcvt.f32.s32 %v698_v57 }
 0xbf5   :  { %v700_v0 = vsel %vm699_vm3, %v695_v62, inf  ;;  %v784_v5 = vcvt.s32.f32 %v782_v63  ;;  %v783_v14 = vcvt.s32.f32 %v781_v10 }
 0xbf6   :  { %v705_v35 = vshll.u32 %v704_v28, 16 }
 0xbfb   :  { %669 = vmin.xlane.f32.xlu2 %v668_v42 }
 0xc03   :  { %645 = vmin.xlane.f32.xlu2 %v644_v37 }
 0xc66   :  { %v838_v46 = vpop.xlane.xlu2 %837 }
 0xc67   :  { %vm839_vm15 = vcmp.eq.f32.partialorder %v835_v34, %v838_v46 }
 0xc68   :  { %v840_v47 = vsel %vm839_vm15, %v1466_v48, 4 }
 0xc69   :  { %v841_v50 = vsel %vm757_vm0, %v840_v47, 2147483647 }
 0xc6a   :  { %v843_v51 = vshra.s32 %v841_v50, 16  ;;  %v842_v49 = vand.u32 65535, %v841_v50 }
 0xc6c   :  { %v845_v53 = vcvt.s32.f32 %v843_v51  ;;  %v844_v21 = vcvt.s32.f32 %v842_v49 }
 0xc6e   :  { %846 = vmin.xlane.f32.xlu0 %v845_v53  ;;  %v670_v55 = vpop.xlane.xlu2 %669 }
 0xc6f   :  { %vm671_vm2 = vcmp.eq.f32.partialorder %v668_v42, %v670_v55  ;;  %v676_v19 = vcvt.f32.s32 %v670_v55 }
 0xc70   :  { %v672_v59 = vsel %vm671_vm2, %v667_v56, inf }
 0xc71   :  { %673 = vmin.xlane.f32.xlu1 %v672_v59  ;;  %v677_v25 = vshll.u32 %v676_v19, 16 }
 0xc76   :  { %v646_v2 = vpop.xlane.xlu2 %645  ;;  %701 = vmin.xlane.f32.xlu0 %v700_v0 }
 0xc77   :  { %v647_v4 = vcvt.f32.s32 %v646_v2 }
 0xc79   :  { %v650_v6 = vadd.s32 %v649_v3, %v647_v4  ;;  %787 = vadd.xlane.f32.xlu1 %v784_v5 }
 0xc7b   :  { %v739_v8 = vrot.slane %v650_v6, 2  ;;  %v740_v9 = vrot.slane %v650_v6, 4  ;;  %v741_v11 = vrot.slane %v650_v6, 6 }
 0xc7d   :  { %v742_v12 = vsel %vm730_vm11, %v650_v6, %v739_v8 }
 0xc7e   :  { %v743_v13 = vsel %vm732_vm12, %v742_v12, %v740_v9 }
 0xc7f   :  { %v744_v44 = vsel %vm734_vm1, %v743_v13, %v741_v11 }
 0xc80   :  { %v793_v22 = vsel %vm1612_vm13, %v744_v44, 0 }
 0xc81   :  { %785 = vadd.xlane.f32.xlu1 %v783_v14  ;;  %v794_v1 = vsel %vm757_vm0, %v793_v22, 0 }
 0xc82   :  { %v796_v15 = vshrl.u32 %v794_v1, 16  ;;  %v795_v17 = vand.u32 65535, %v794_v1 }
 0xc84   :  { %v798_v16 = vcvt.s32.f32 %v796_v15  ;;  %v797_v18 = vcvt.s32.f32 %v795_v17 }
 0xc86   :  { %801 = vadd.xlane.f32.xlu0 %v798_v16 }
 0xc8e   :  { %799 = vadd.xlane.f32.xlu0 %v797_v18 }
 0xce1   :  { %v847_v20 = vpop.xlane.xlu0 %846 }
 0xce2   :  { %vm848_vm4 = vcmp.eq.f32.partialorder %v845_v53, %v847_v20  ;;  %v853_v61 = vcvt.f32.s32 %v847_v20 }
 0xce3   :  { %v849_v23 = vsel %vm848_vm4, %v844_v21, inf }
 0xce4   :  { %850 = vmin.xlane.f32.xlu2 %v849_v23  ;;  %v674_v24 = vpop.xlane.xlu1 %673  ;;  %v854_v63 = vshll.u32 %v853_v61, 16 }
 0xce5   :  { %v675_v26 = vcvt.f32.s32 %v674_v24 }
 0xce7   :  { %v678_v31 = vadd.s32 %v677_v25, %v675_v26 }
 0xce9   :  { %v745_v29 = vrot.slane %v678_v31, 2  ;;  %v746_v30 = vrot.slane %v678_v31, 4  ;;  %v702_v32 = vpop.xlane.xlu0 %701  ;;  %v747_v38 = vrot.slane %v678_v31, 6 }
 0xcea   :  { %v703_v36 = vcvt.f32.s32 %v702_v32 }
 0xceb   :  { %v748_v34 = vsel %vm730_vm11, %v678_v31, %v745_v29 }
 0xcec   :  { %v706_v39 = vadd.s32 %v705_v35, %v703_v36  ;;  %v749_v40 = vsel %vm732_vm12, %v748_v34, %v746_v30  ;;  %v788_v23 = vpop.xlane.xlu1 %787 }
 0xced   :  { %v750_v41 = vsel %vm734_vm1, %v749_v40, %v747_v38  ;;  %v790_v34 = vcvt.f32.s32 %v788_v23 }
 0xcee   :  { %v751_v42 = vrot.slane %v706_v39, 2  ;;  %v752_v43 = vrot.slane %v706_v39, 4  ;;  %v807_v45 = vsel %vm1612_vm13, %v750_v41, 0  ;;  %v753_v47 = vrot.slane %v706_v39, 6 }
 0xcef   :  { %v808_v33 = vsel %vm757_vm0, %v807_v45, 0 }
 0xcf0   :  { %v810_v37 = vshrl.u32 %v808_v33, 16  ;;  %v809_v46 = vand.u32 65535, %v808_v33  ;;  %v754_v50 = vsel %vm730_vm11, %v706_v39, %v751_v42 }
 0xcf1   :  { %v755_v51 = vsel %vm732_vm12, %v754_v50, %v752_v43 }
 0xcf2   :  { %v812_v52 = vcvt.s32.f32 %v810_v37  ;;  %v811_v53 = vcvt.s32.f32 %v809_v46  ;;  %v756_v54 = vsel %vm734_vm1, %v755_v51, %v753_v47  ;;  %v791_v37 = vshll.u32 %v790_v34, 16 }
 0xcf3   :  { %v821_v55 = vsel %vm1612_vm13, %v756_v54, 0 }
 0xcf4   :  { %815 = vadd.xlane.f32.xlu2 %v812_v52  ;;  %813 = vadd.xlane.f32.xlu1 %v811_v53  ;;  %v822_v56 = vsel %vm757_vm0, %v821_v55, 0  ;;  %v786_v26 = vpop.xlane.xlu1 %785 }
 0xcf5   :  { %v824_v57 = vshrl.u32 %v822_v56, 16  ;;  %v823_v59 = vand.u32 65535, %v822_v56  ;;  %v789_v43 = vcvt.f32.s32 %v786_v26 }
 0xcf7   :  { %v826_v58 = vcvt.s32.f32 %v824_v57  ;;  %v825_v60 = vcvt.s32.f32 %v823_v59  ;;  %v792_v57 = vadd.s32 %v791_v37, %v789_v43 }
 0xcf9   :  { %v802_v25 = vpop.xlane.xlu0 %801 }
 0xcfa   :  { %v804_v36 = vcvt.f32.s32 %v802_v25 }
 0xcfc   :  { %829 = vadd.xlane.f32.xlu2 %v826_v58  ;;  %v805_v45 = vshll.u32 %v804_v36, 16 }
 0xd01   :  { %v800_v28 = vpop.xlane.xlu0 %799 }
 0xd02   :  { %v803_v39 = vcvt.f32.s32 %v800_v28 }
 0xd04   :  { %827 = vadd.xlane.f32.xlu2 %v825_v60  ;;  %v806_v50 = vadd.s32 %v805_v45, %v803_v39 }
 0xd06   :  { %v913_v61 = vsel %vm730_vm11, %v792_v57, %v806_v50  ;;  %vm920_vm11 = vcmask 48128  }
 0xd57   :  { %v851_v62 = vpop.xlane.xlu2 %850 }
 0xd58   :  { %v852_v0 = vcvt.f32.s32 %v851_v62 }
 0xd5a   :  { %v855_v2 = vadd.s32 %v854_v63, %v852_v0 }
 0xd5c   :  { %vm856_vm5 = vcmp.eq.s32.totalorder %v1466_v48, %v855_v2 }
 0xd5d   :  { %v857_v27 = vsel %vm856_vm5, %v1537_v7, 0  ;;  %v885_v3 = vsel %vm856_vm5, %v750_v41, 0  ;;  %v871_v4 = vsel %vm856_vm5, %v744_v44, 0  ;;  %v899_v44 = vsel %vm856_vm5, %v756_v54, 0 }
 0xd5e   :  { %v858_v5 = vsel %vm757_vm0, %v857_v27, 0  ;;  %v886_v6 = vsel %vm757_vm0, %v885_v3, 0  ;;  %v872_v8 = vsel %vm757_vm0, %v871_v4, 0  ;;  %v900_v18 = vsel %vm757_vm0, %v899_v44, 0 }
 0xd5f   :  { %v860_v9 = vshrl.u32 %v858_v5, 16  ;;  %v888_v10 = vshrl.u32 %v886_v6, 16  ;;  %v874_v11 = vshrl.u32 %v872_v8, 16  ;;  %v859_v7 = vand.u32 65535, %v858_v5 }
 0xd60   :  { %v887_v22 = vand.u32 65535, %v886_v6  ;;  %v873_v1 = vand.u32 65535, %v872_v8  ;;  %v902_v49 = vshrl.u32 %v900_v18, 16  ;;  %v901_v19 = vand.u32 65535, %v900_v18 }
 0xd61   :  { %v862_v12 = vcvt.s32.f32 %v860_v9  ;;  %v890_v13 = vcvt.s32.f32 %v888_v10  ;;  %v876_v14 = vcvt.s32.f32 %v874_v11  ;;  %v861_v15 = vcvt.s32.f32 %v859_v7 }
 0xd62   :  { %v889_v16 = vcvt.s32.f32 %v887_v22  ;;  %v875_v17 = vcvt.s32.f32 %v873_v1  ;;  %v904_v20 = vcvt.s32.f32 %v902_v49  ;;  %v903_v21 = vcvt.s32.f32 %v901_v19 }
 0xd63   :  { %865 = vadd.xlane.f32.xlu0 %v862_v12  ;;  %893 = vadd.xlane.f32.xlu2 %v890_v13  ;;  %vm916_vm0 = vcmask 31744  }
 0xd64   :  { %879 = vadd.xlane.f32.xlu1 %v876_v14 }
 0xd67   :  { %v816_v24 = vpop.xlane.xlu2 %815  ;;  %v814_v31 = vpop.xlane.xlu1 %813 }
 0xd68   :  { %v818_v35 = vcvt.f32.s32 %v816_v24  ;;  %v817_v46 = vcvt.f32.s32 %v814_v31 }
 0xd6a   :  { %v819_v41 = vshll.u32 %v818_v35, 16 }
 0xd6b   :  { %863 = vadd.xlane.f32.xlu0 %v861_v15  ;;  %891 = vadd.xlane.f32.xlu2 %v889_v16 }
 0xd6c   :  { %877 = vadd.xlane.f32.xlu1 %v875_v17  ;;  %v820_v55 = vadd.s32 %v819_v41, %v817_v46 }
 0xd6e   :  { %v914_v0 = vsel %vm732_vm12, %v913_v61, %v820_v55  ;;  %vm924_vm12 = vcmask 64512  }
 0xd6f   :  { %v830_v48 = vpop.xlane.xlu2 %829 }
 0xd70   :  { %v832_v40 = vcvt.f32.s32 %v830_v48 }
 0xd72   :  { %v833_v51 = vshll.u32 %v832_v40, 16 }
 0xd73   :  { %907 = vadd.xlane.f32.xlu0 %v904_v20 }
 0xd74   :  { %905 = vadd.xlane.f32.xlu1 %v903_v21 }
 0xd77   :  { %v828_v29 = vpop.xlane.xlu2 %827 }
 0xd78   :  { %v831_v33 = vcvt.f32.s32 %v828_v29 }
 0xd7a   :  { %v834_v58 = vadd.s32 %v833_v51, %v831_v33 }
 0xd7c   :  { %v915_v27 = vsel %vm734_vm1, %v914_v0, %v834_v58 }
 0xdd6   :  { %v866_v30 = vpop.xlane.xlu0 %865  ;;  %v894_v38 = vpop.xlane.xlu2 %893 }
 0xdd7   :  { %v880_v32 = vpop.xlane.xlu1 %879  ;;  %v868_v42 = vcvt.f32.s32 %v866_v30  ;;  %v896_v2 = vcvt.f32.s32 %v894_v38 }
 0xdd8   :  { %v882_v52 = vcvt.f32.s32 %v880_v32 }
 0xdd9   :  { %v869_v56 = vshll.u32 %v868_v42, 16  ;;  %v897_v10 = vshll.u32 %v896_v2, 16 }
 0xdda   :  { %v883_v62 = vshll.u32 %v882_v52, 16 }
 0xdde   :  { %v864_v47 = vpop.xlane.xlu0 %863  ;;  %v892_v63 = vpop.xlane.xlu2 %891 }
 0xddf   :  { %v867_v53 = vcvt.f32.s32 %v864_v47  ;;  %v878_v54 = vpop.xlane.xlu1 %877  ;;  %v895_v5 = vcvt.f32.s32 %v892_v63 }
 0xde0   :  { %v881_v59 = vcvt.f32.s32 %v878_v54 }
 0xde1   :  { %v870_v60 = vadd.s32 %v869_v56, %v867_v53  ;;  %v898_v14 = vadd.s32 %v897_v10, %v895_v5 }
 0xde2   :  { %v884_v3 = vadd.s32 %v883_v62, %v881_v59 }
 0xde3   :  { %v917_v4 = vsel %vm916_vm0, %v915_v27, %v870_v60 }
 0xde4   :  { %v919_v11 = vsel %vm918_vm6, %v917_v4, %v884_v3 }
 0xde5   :  { %v921_v22 = vsel %vm920_vm11, %v919_v11, %v898_v14 }
 0xde6   :  { %v908_v6 = vpop.xlane.xlu0 %907 }
 0xde7   :  { %v910_v8 = vcvt.f32.s32 %v908_v6  ;;  %v906_v9 = vpop.xlane.xlu1 %905 }
 0xde8   :  { %v909_v13 = vcvt.f32.s32 %v906_v9 }
 0xde9   :  { %v911_v12 = vshll.u32 %v910_v8, 16 }
 0xdeb   :  { %v912_v7 = vadd.s32 %v911_v12, %v909_v13 }
 0xded   :  { %v923_v1 = vsel %vm922_vm7, %v921_v22, %v912_v7 }
 0xdee   :  { %v925_v44 = vsel %vm924_vm12, %v923_v1, 0 }
 0xdef   :  { %926 = vst [vmem:[#allocation2] sm:$0x3] %v925_v44 }
 0xdf0   :  { %937 = dma.vmem_to_hbm [thread:$0]  %s933_s9, 32, %s935_s12, [#allocation3]  }
 0xdf1   :  { %999 = dma.done.wait [#allocation3], 32  }
 0xdf2   :  { %1000 = vsyncadd [#allocation3], 4294967264 }
 0xdf3   :  { %942 = vsyncpa [#allocation3], 1 }

</bundles_post_ra>
